<compile_context>
chip_gen: v7x
topology: tpu7x:2x2x1
jax: 0.10.0
libtpu: 0.0.40
codegen_flags: <defaults>
</compile_context>

<pallas_src>
import numpy as np
import jax
import jax.numpy as jnp
from jax import lax
from jax.experimental import pallas as pl
from jax.experimental.pallas import tpu as pltpu


# --------------------------------------------------------------------------
# in-kernel helpers: zero-filled shifts (no padding scratch, no masked stores)
# --------------------------------------------------------------------------
def _shift_w(x, d):
    """y[..., j, :] = x[..., j + d, :] (W axis = -2), zero-filled out of range."""
    if d == 0:
        return x
    pad = jnp.zeros(x.shape[:-2] + (abs(d),) + x.shape[-1:], x.dtype)
    if d > 0:
        return jnp.concatenate([x[..., d:, :], pad], axis=-2)
    return jnp.concatenate([pad, x[..., :d, :]], axis=-2)


def _shift_h(x, d):
    """y[:, i] = x[:, i + d] (per-image H axis = 1), zero-filled out of range."""
    if d == 0:
        return x
    nb = x.shape[0]
    pad = jnp.zeros((nb, abs(d)) + x.shape[2:], x.dtype)
    if d > 0:
        return jnp.concatenate([x[:, d:], pad], axis=1)
    return jnp.concatenate([pad, x[:, :d]], axis=1)


def _conv3x3_packed(x, wp):
    """3x3, stride-1, pad-1 conv as a single packed matmul.

    x:  (Nb, H, W, Cin) in compute dtype.
    wp: (3*Cin, 3*Cout) -- rows grouped by kw (W shift), cols grouped by kh.
    Returns (Nb, H, W, Cout) in f32.
    """
    nb, h, w, cin = x.shape
    cout = wp.shape[-1] // 3
    lhs = jnp.concatenate([_shift_w(x, -1), x, _shift_w(x, 1)], axis=-1)
    res = jnp.dot(lhs.reshape(nb * h * w, 3 * cin), wp,
                  preferred_element_type=jnp.float32)
    res = res.reshape(nb, h, w, 3 * cout)
    acc = None
    for kh in range(3):                       # output-side H offsets -1, 0, +1
        part = _shift_h(res[..., kh * cout:(kh + 1) * cout], kh - 1)
        acc = part if acc is None else acc + part
    return acc


def _conv_s2d_packed(x4, wp):
    """3x3/stride-2/pad-1 conv (as a 2x2 conv over space-to-depth input) plus
    the 1x1/stride-2 shortcut, all in a single packed matmul.

    x4: (Nb, HO, WO, 4*Cin) in compute dtype.
    wp: (8*Cin, 3*Cout) -- K grouped by dj in (-1, 0); N cols = [di=-1 | di=0 |
        shortcut] (shortcut only uses the (0,0)-subpixel rows of the dj=0 block).
    Returns (conv, shortcut), both (Nb, HO, WO, Cout) in f32.
    """
    nb, ho, wo, c4 = x4.shape
    cout = wp.shape[-1] // 3
    lhs = jnp.concatenate([_shift_w(x4, -1), x4], axis=-1)
    res = jnp.dot(lhs.reshape(nb * ho * wo, 2 * c4), wp,
                  preferred_element_type=jnp.float32)
    res = res.reshape(nb, ho, wo, 3 * cout)
    conv = _shift_h(res[..., :cout], -1) + res[..., cout:2 * cout]
    sc = res[..., 2 * cout:]
    return conv, sc


# --------------------------------------------------------------------------
# kernels (one grid step == Nb batch items, whole images resident in VMEM)
# --------------------------------------------------------------------------
def _block_identity_kernel(x_ref, w1p_ref, w2p_ref, b_ref, o_ref):
    """Residual block, stride 1, identity shortcut (Cin == Cout)."""
    x = x_ref[...]                                   # (Nb, H, W, C)
    b = b_ref[...]                                   # (2, C) f32: b1, b2
    y1 = jnp.maximum(_conv3x3_packed(x, w1p_ref[...]) + b[0], 0.0)   # BN1 + ReLU
    acc2 = _conv3x3_packed(y1.astype(x.dtype), w2p_ref[...])
    out = jnp.maximum(acc2 + b[1] + x.astype(jnp.float32), 0.0)      # BN2+add+ReLU
    o_ref[...] = out.astype(o_ref.dtype)


def _block_downsample_kernel(x_ref, w1p_ref, w2p_ref, b_ref, o_ref):
    """Residual block, stride 2 (space-to-depth input), 1x1-conv shortcut."""
    x4 = x_ref[...]                                  # (Nb, HO, WO, 4*Cin)
    b = b_ref[...]                                   # (2, Cout) f32: b1, b2+bsc
    conv1, sc = _conv_s2d_packed(x4, w1p_ref[...])   # shortcut rides the same matmul
    y1 = jnp.maximum(conv1 + b[0], 0.0)                              # BN1 + ReLU
    acc2 = _conv3x3_packed(y1.astype(x4.dtype), w2p_ref[...])
    out = jnp.maximum(acc2 + b[1] + sc, 0.0)         # BN2 + BNsc + add + ReLU
    o_ref[...] = out.astype(o_ref.dtype)


# --------------------------------------------------------------------------
# wrapper-side weight packing (BN scales folded into the conv weights)
# --------------------------------------------------------------------------
def _pack_w3x3(w, scale):
    """(3,3,Cin,Cout) HWIO -> (3*Cin, 3*Cout); block (kw, kh) = w[kh, kw]*scale."""
    w = w * scale[None, None, None, :]
    wt = jnp.transpose(w, (1, 2, 0, 3))              # (kw, Cin, kh, Cout)
    return wt.reshape(3 * w.shape[2], 3 * w.shape[3])


def _pack_w_s2d(w1, s1, wsc, ssc):
    """Stride-2 3x3 conv + 1x1 shortcut as one (8*Cin, 3*Cout) packed RHS over
    the space-to-depth LHS (K grouped by dj, N = [di=-1 | di=0 | shortcut])."""
    cin, cout = w1.shape[2], w1.shape[3]
    w1 = w1 * s1[None, None, None, :]
    wsc = wsc * ssc[None, :]
    zero = jnp.zeros((cin, cout), w1.dtype)
    k_of = {(-1, 1): 0, (0, 0): 1, (0, 1): 2}        # (offset, subpixel) -> kernel idx

    def block(di, dj):
        taps = []
        for a in (0, 1):
            for bsub in (0, 1):
                kh = k_of.get((di, a))
                kw = k_of.get((dj, bsub))
                taps.append(zero if kh is None or kw is None else w1[kh, kw])
        return jnp.concatenate(taps, axis=0)         # (4*Cin, Cout)

    rows = []
    for dj in (-1, 0):                               # K blocks, jj = dj + 1
        cols = [block(di, dj) for di in (-1, 0)]     # N blocks ii = 0, 1
        if dj == 0:                                  # shortcut uses (0,0) subpixel only
            sc_block = jnp.concatenate(
                [wsc, jnp.zeros((3 * cin, cout), w1.dtype)], axis=0)
        else:
            sc_block = jnp.zeros((4 * cin, cout), w1.dtype)
        rows.append(jnp.concatenate(cols + [sc_block], axis=1))     # (4*Cin, 3*Cout)
    return jnp.concatenate(rows, axis=0)                             # (8*Cin, 3*Cout)


def _space_to_depth(x):
    """NHWC (N, H, W, C) -> (N, H//2, W//2, 4C); channel order (a, b, c)."""
    n, h, w, c = x.shape
    x = x.reshape(n, h // 2, 2, w // 2, 2, c)
    x = jnp.transpose(x, (0, 1, 3, 2, 4, 5))
    return x.reshape(n, h // 2, w // 2, 4 * c)


def _pick_nb(n, hw):
    """Batch items per grid step: keep matmul M = nb*H*W >= ~512 when cheap."""
    if hw >= 512:
        return 1
    for nb in (8, 4, 2):
        if n % nb == 0 and nb * hw <= 4096:
            return nb
    return 1


_COMPILER_PARAMS = pltpu.CompilerParams(
    dimension_semantics=("parallel",),               # batch items are independent
    vmem_limit_bytes=48 * 1024 * 1024)


# --------------------------------------------------------------------------
# per-block pallas_call wrappers (activations live in compute_dtype)
# --------------------------------------------------------------------------
def _residual_block_identity(x_nhwc, p, compute_dtype):
    n, h, w, c = x_nhwc.shape
    cout = p["w1"].shape[-1]
    assert cout == c
    nb = _pick_nb(n, h * w)
    w1p = _pack_w3x3(p["w1"], p["s1"]).astype(compute_dtype)
    w2p = _pack_w3x3(p["w2"], p["s2"]).astype(compute_dtype)
    bias = jnp.stack([p["b1"], p["b2"]], axis=0)     # (2, C) f32

    return pl.pallas_call(
        _block_identity_kernel,
        out_shape=jax.ShapeDtypeStruct((n, h, w, cout), compute_dtype),
        grid_spec=pltpu.PrefetchScalarGridSpec(
            num_scalar_prefetch=0,
            grid=(n // nb,),
            in_specs=[
                pl.BlockSpec((nb, h, w, c), lambda i: (i, 0, 0, 0)),
                pl.BlockSpec((3 * c, 3 * cout), lambda i: (0, 0)),
                pl.BlockSpec((3 * cout, 3 * cout), lambda i: (0, 0)),
                pl.BlockSpec((2, cout), lambda i: (0, 0)),
            ],
            out_specs=pl.BlockSpec((nb, h, w, cout), lambda i: (i, 0, 0, 0)),
        ),
        compiler_params=_COMPILER_PARAMS,
    )(x_nhwc.astype(compute_dtype), w1p, w2p, bias)


def _residual_block_downsample(x_nhwc, p, compute_dtype):
    n, h, w, cin = x_nhwc.shape
    assert h % 2 == 0 and w % 2 == 0, "downsample block needs even H, W"
    cout = p["w1"].shape[-1]
    ho, wo = h // 2, w // 2
    nb = _pick_nb(n, ho * wo)

    x4 = _space_to_depth(x_nhwc.astype(compute_dtype))          # (n, ho, wo, 4cin)
    w1p = _pack_w_s2d(p["w1"], p["s1"], p["wsc"], p["ssc"]).astype(compute_dtype)
    w2p = _pack_w3x3(p["w2"], p["s2"]).astype(compute_dtype)
    bias = jnp.stack([p["b1"], p["b2"] + p["bsc"]], axis=0)     # (2, Cout) f32

    return pl.pallas_call(
        _block_downsample_kernel,
        out_shape=jax.ShapeDtypeStruct((n, ho, wo, cout), compute_dtype),
        grid_spec=pltpu.PrefetchScalarGridSpec(
            num_scalar_prefetch=0,
            grid=(n // nb,),
            in_specs=[
                pl.BlockSpec((nb, ho, wo, 4 * cin), lambda i: (i, 0, 0, 0)),
                pl.BlockSpec((8 * cin, 3 * cout), lambda i: (0, 0)),
                pl.BlockSpec((3 * cout, 3 * cout), lambda i: (0, 0)),
                pl.BlockSpec((2, cout), lambda i: (0, 0)),
            ],
            out_specs=pl.BlockSpec((nb, ho, wo, cout), lambda i: (i, 0, 0, 0)),
        ),
        compiler_params=_COMPILER_PARAMS,
    )(x4, w1p, w2p, bias)


def resnet_stage(x_nchw, stage_params, *, downsample=True,
                 compute_dtype=jnp.bfloat16):
    """ResNetStage forward (inference).  bf16 MXU path by default (f32
    accumulation kept); pass compute_dtype=jnp.float32 for exact parity."""
    # NCHW -> NHWC exactly once for the whole stage.
    x = jnp.transpose(x_nchw, (0, 2, 3, 1)).astype(compute_dtype)
    for bi, p in enumerate(stage_params):
        if bi == 0 and "wsc" in p:
            if not downsample:
                # TODO(synk): stride-1 projection-shortcut (Cin != Cout, no
                # downsample) first-block variant is not implemented.
                raise NotImplementedError("stride-1 projection shortcut")
            x = _residual_block_downsample(x, p, compute_dtype)
        else:
            x = _residual_block_identity(x, p, compute_dtype)
    # NHWC -> NCHW exactly once; final output back to f32.
    return jnp.transpose(x, (0, 3, 1, 2)).astype(jnp.float32)


# --------------------------------------------------------------------------
# deterministic parameter construction (inference-folded BatchNorm)
# --------------------------------------------------------------------------
def _fold_bn(key, c, eps=1e-5):
    k1, k2, k3, k4 = jax.random.split(key, 4)
    gamma = jax.random.uniform(k1, (c,), jnp.float32, 0.5, 1.5)
    beta = 0.1 * jax.random.normal(k2, (c,), jnp.float32)
    mean = 0.1 * jax.random.normal(k3, (c,), jnp.float32)
    var = jax.random.uniform(k4, (c,), jnp.float32, 0.5, 1.5)
    scale = gamma / jnp.sqrt(var + eps)
    return scale, beta - mean * scale


def make_block_params(key, cin, cout, conv_shortcut):
    ks = jax.random.split(key, 6)
    p = {"w1": 0.1 * jax.random.normal(ks[0], (3, 3, cin, cout), jnp.float32),   # HWIO
         "w2": 0.1 * jax.random.normal(ks[1], (3, 3, cout, cout), jnp.float32)}  # HWIO
    p["s1"], p["b1"] = _fold_bn(ks[2], cout)
    p["s2"], p["b2"] = _fold_bn(ks[3], cout)
    if conv_shortcut:
        p["wsc"] = 0.1 * jax.random.normal(ks[4], (cin, cout), jnp.float32)
        p["ssc"], p["bsc"] = _fold_bn(ks[5], cout)
    return p


def make_stage_params(key, cin, cout, num_blocks, downsample=True):
    keys = jax.random.split(key, num_blocks)
    params = [make_block_params(keys[0], cin, cout, downsample or cin != cout)]
    for i in range(1, num_blocks):
        params.append(make_block_params(keys[i], cout, cout, False))
    return params


# --------------------------------------------------------------------------
# pure-JAX reference (NHWC convolutions)
# --------------------------------------------------------------------------
def _conv_ref(x, w, stride, pad):
    return lax.conv_general_dilated(
        x, w, (stride, stride), ((pad, pad), (pad, pad)),
        dimension_numbers=("NHWC", "HWIO", "NHWC"),
        precision=lax.Precision.HIGHEST)


def reference_stage(x_nchw, stage_params, *, downsample=True):
    x = jnp.transpose(x_nchw, (0, 2, 3, 1)).astype(jnp.float32)
    for bi, p in enumerate(stage_params):
        stride = 2 if (bi == 0 and downsample) else 1
        y1 = jnp.maximum(_conv_ref(x, p["w1"], stride, 1) * p["s1"] + p["b1"], 0.0)
        y2 = _conv_ref(y1, p["w2"], 1, 1) * p["s2"] + p["b2"]
        if "wsc" in p:
            sc = _conv_ref(x, p["wsc"][None, None], stride, 0) * p["ssc"] + p["bsc"]
        else:
            sc = x
        x = jnp.maximum(y2 + sc, 0.0)
    return jnp.transpose(x, (0, 3, 1, 2))


if __name__ == "__main__":
    key = jax.random.PRNGKey(0)
    k_x, k_p = jax.random.split(key)

    N, Cin, Cout, H, W = 2, 4, 8, 16, 16
    NUM_BLOCKS = 2
    DOWNSAMPLE = True            # ResNetStage default: first block downsamples

    x = jax.random.normal(k_x, (N, Cin, H, W), jnp.float32)
    params = make_stage_params(k_p, Cin, Cout, NUM_BLOCKS, downsample=DOWNSAMPLE)

    ref = np.asarray(reference_stage(x, params, downsample=DOWNSAMPLE))

    # Exact-parity f32 path.
    f32_fn = jax.jit(lambda xx, pp: resnet_stage(
        xx, pp, downsample=DOWNSAMPLE, compute_dtype=jnp.float32))
    out_f32 = np.asarray(jax.block_until_ready(f32_fn(x, params)))
    if not np.allclose(out_f32, ref, atol=1e-2, rtol=1e-2):
        err = float(np.max(np.abs(out_f32 - ref)))
        raise AssertionError(f"f32 Pallas kernel mismatch vs reference, max|diff|={err}")

    # Default bf16 MXU path (bf16 weights + activations, f32 accumulation).
    bf16_fn = jax.jit(lambda xx, pp: resnet_stage(xx, pp, downsample=DOWNSAMPLE))
    out_bf16 = np.asarray(jax.block_until_ready(bf16_fn(x, params)))
    if not np.allclose(out_bf16, ref, atol=1e-1, rtol=1e-1):
        err = float(np.max(np.abs(out_bf16 - ref)))
        raise AssertionError(f"bf16 Pallas kernel mismatch vs reference, max|diff|={err}")

    print("KERNEL_OK")
</pallas_src>

<mosaic_0001>
module attributes {stable_mosaic.version = 11 : i64} {
  func.func @_block_downsample_kernel(%arg0: i32, %arg1: memref<2x8x8x16xf32, #tpu.memory_space<vmem>>, %arg2: memref<32x24xf32, #tpu.memory_space<vmem>>, %arg3: memref<24x24xf32, #tpu.memory_space<vmem>>, %arg4: memref<2x8xf32, #tpu.memory_space<vmem>>, %arg5: memref<2x8x8x8xf32, #tpu.memory_space<vmem>>) attributes {dimension_semantics = [#tpu.dimension_semantics<parallel>], iteration_bounds = array<i64: 1>, scalar_prefetch = 0 : i64, scratch_operands = 0 : i64, tpu.core_type = #tpu.core_type<tc>, window_params = [{transform_indices = @transform_0, window_bounds = array<i64: 2, 8, 8, 16>}, {pipeline_mode = #tpu.pipeline_mode<synchronous>, transform_indices = @transform_1, window_bounds = array<i64: 32, 24>}, {pipeline_mode = #tpu.pipeline_mode<synchronous>, transform_indices = @transform_2, window_bounds = array<i64: 24, 24>}, {pipeline_mode = #tpu.pipeline_mode<synchronous>, transform_indices = @transform_3, window_bounds = array<i64: 2, 8>}, {transform_indices = @transform_4, window_bounds = array<i64: 2, 8, 8, 8>}]} {
    %c0 = arith.constant 0 : index
    %c0_0 = arith.constant 0 : index
    %c0_1 = arith.constant 0 : index
    %c0_2 = arith.constant 0 : index
    %0 = vector.load %arg1[%c0, %c0_0, %c0_1, %c0_2] : memref<2x8x8x16xf32, #tpu.memory_space<vmem>>, vector<2x8x8x16xf32>
    %c0_3 = arith.constant 0 : index
    %c0_4 = arith.constant 0 : index
    %1 = vector.load %arg4[%c0_3, %c0_4] : memref<2x8xf32, #tpu.memory_space<vmem>>, vector<2x8xf32>
    %c0_5 = arith.constant 0 : index
    %c0_6 = arith.constant 0 : index
    %2 = vector.load %arg2[%c0_5, %c0_6] : memref<32x24xf32, #tpu.memory_space<vmem>>, vector<32x24xf32>
    %cst = arith.constant 0.000000e+00 : f32
    %3 = vector.broadcast %cst : f32 to vector<2x8x1x16xf32>
    %4 = vector.extract_strided_slice %0 {offsets = [0, 0, 0, 0], sizes = [2, 8, 7, 16], strides = [1, 1, 1, 1]} : vector<2x8x8x16xf32> to vector<2x8x7x16xf32>
    %5 = tpu.concatenate %3, %4 in 2 : vector<2x8x1x16xf32>, vector<2x8x7x16xf32> -> vector<2x8x8x16xf32>
    %6 = tpu.concatenate %5, %0 in 3 : vector<2x8x8x16xf32>, vector<2x8x8x16xf32> -> vector<2x8x8x32xf32>
    %7 = vector.shape_cast %6 : vector<2x8x8x32xf32> to vector<128x32xf32>
    %cst_7 = arith.constant dense<0.000000e+00> : vector<128x24xf32>
    %8 = tpu.matmul %7, %2, %cst_7 {dimension_numbers = #tpu.dot_dimension_numbers<[1], [0], [0], [1], [0, 0, 1, 1], [], []>} : vector<128x32xf32>, vector<32x24xf32>, vector<128x24xf32> -> vector<128x24xf32>
    %9 = vector.shape_cast %8 : vector<128x24xf32> to vector<2x8x8x24xf32>
    %10 = vector.extract_strided_slice %9 {offsets = [0, 0, 0, 0], sizes = [2, 8, 8, 8], strides = [1, 1, 1, 1]} : vector<2x8x8x24xf32> to vector<2x8x8x8xf32>
    %cst_8 = arith.constant 0.000000e+00 : f32
    %11 = vector.broadcast %cst_8 : f32 to vector<2x1x8x8xf32>
    %12 = vector.extract_strided_slice %10 {offsets = [0, 0, 0, 0], sizes = [2, 7, 8, 8], strides = [1, 1, 1, 1]} : vector<2x8x8x8xf32> to vector<2x7x8x8xf32>
    %13 = tpu.concatenate %11, %12 in 1 : vector<2x1x8x8xf32>, vector<2x7x8x8xf32> -> vector<2x8x8x8xf32>
    %14 = vector.extract_strided_slice %9 {offsets = [0, 0, 0, 8], sizes = [2, 8, 8, 8], strides = [1, 1, 1, 1]} : vector<2x8x8x24xf32> to vector<2x8x8x8xf32>
    %15 = arith.addf %13, %14 : vector<2x8x8x8xf32>
    %16 = vector.extract_strided_slice %9 {offsets = [0, 0, 0, 16], sizes = [2, 8, 8, 8], strides = [1, 1, 1, 1]} : vector<2x8x8x24xf32> to vector<2x8x8x8xf32>
    %17 = vector.extract_strided_slice %1 {offsets = [0, 0], sizes = [1, 8], strides = [1, 1]} : vector<2x8xf32> to vector<1x8xf32>
    %18 = vector.shape_cast %17 : vector<1x8xf32> to vector<8xf32>
    %19 = vector.shape_cast %18 : vector<8xf32> to vector<1x1x1x8xf32>
    %20 = vector.broadcast %19 : vector<1x1x1x8xf32> to vector<2x8x8x8xf32>
    %21 = arith.addf %15, %20 : vector<2x8x8x8xf32>
    %cst_9 = arith.constant 0.000000e+00 : f32
    %22 = vector.broadcast %cst_9 : f32 to vector<2x8x8x8xf32>
    %23 = arith.maximumf %21, %22 : vector<2x8x8x8xf32>
    %c0_10 = arith.constant 0 : index
    %c0_11 = arith.constant 0 : index
    %24 = vector.load %arg3[%c0_10, %c0_11] : memref<24x24xf32, #tpu.memory_space<vmem>>, vector<24x24xf32>
    %cst_12 = arith.constant 0.000000e+00 : f32
    %25 = vector.broadcast %cst_12 : f32 to vector<2x8x1x8xf32>
    %26 = vector.extract_strided_slice %23 {offsets = [0, 0, 0, 0], sizes = [2, 8, 7, 8], strides = [1, 1, 1, 1]} : vector<2x8x8x8xf32> to vector<2x8x7x8xf32>
    %27 = tpu.concatenate %25, %26 in 2 : vector<2x8x1x8xf32>, vector<2x8x7x8xf32> -> vector<2x8x8x8xf32>
    %cst_13 = arith.constant 0.000000e+00 : f32
    %28 = vector.broadcast %cst_13 : f32 to vector<2x8x1x8xf32>
    %29 = vector.extract_strided_slice %23 {offsets = [0, 0, 1, 0], sizes = [2, 8, 7, 8], strides = [1, 1, 1, 1]} : vector<2x8x8x8xf32> to vector<2x8x7x8xf32>
    %30 = tpu.concatenate %29, %28 in 2 : vector<2x8x7x8xf32>, vector<2x8x1x8xf32> -> vector<2x8x8x8xf32>
    %31 = tpu.concatenate %27, %23, %30 in 3 : vector<2x8x8x8xf32>, vector<2x8x8x8xf32>, vector<2x8x8x8xf32> -> vector<2x8x8x24xf32>
    %32 = vector.shape_cast %31 : vector<2x8x8x24xf32> to vector<128x24xf32>
    %cst_14 = arith.constant dense<0.000000e+00> : vector<128x24xf32>
    %33 = tpu.matmul %32, %24, %cst_14 {dimension_numbers = #tpu.dot_dimension_numbers<[1], [0], [0], [1], [0, 0, 1, 1], [], []>} : vector<128x24xf32>, vector<24x24xf32>, vector<128x24xf32> -> vector<128x24xf32>
    %34 = vector.shape_cast %33 : vector<128x24xf32> to vector<2x8x8x24xf32>
    %35 = vector.extract_strided_slice %34 {offsets = [0, 0, 0, 0], sizes = [2, 8, 8, 8], strides = [1, 1, 1, 1]} : vector<2x8x8x24xf32> to vector<2x8x8x8xf32>
    %cst_15 = arith.constant 0.000000e+00 : f32
    %36 = vector.broadcast %cst_15 : f32 to vector<2x1x8x8xf32>
    %37 = vector.extract_strided_slice %35 {offsets = [0, 0, 0, 0], sizes = [2, 7, 8, 8], strides = [1, 1, 1, 1]} : vector<2x8x8x8xf32> to vector<2x7x8x8xf32>
    %38 = tpu.concatenate %36, %37 in 1 : vector<2x1x8x8xf32>, vector<2x7x8x8xf32> -> vector<2x8x8x8xf32>
    %39 = vector.extract_strided_slice %34 {offsets = [0, 0, 0, 8], sizes = [2, 8, 8, 8], strides = [1, 1, 1, 1]} : vector<2x8x8x24xf32> to vector<2x8x8x8xf32>
    %40 = arith.addf %38, %39 : vector<2x8x8x8xf32>
    %41 = vector.extract_strided_slice %34 {offsets = [0, 0, 0, 16], sizes = [2, 8, 8, 8], strides = [1, 1, 1, 1]} : vector<2x8x8x24xf32> to vector<2x8x8x8xf32>
    %cst_16 = arith.constant 0.000000e+00 : f32
    %42 = vector.broadcast %cst_16 : f32 to vector<2x1x8x8xf32>
    %43 = vector.extract_strided_slice %41 {offsets = [0, 1, 0, 0], sizes = [2, 7, 8, 8], strides = [1, 1, 1, 1]} : vector<2x8x8x8xf32> to vector<2x7x8x8xf32>
    %44 = tpu.concatenate %43, %42 in 1 : vector<2x7x8x8xf32>, vector<2x1x8x8xf32> -> vector<2x8x8x8xf32>
    %45 = arith.addf %40, %44 : vector<2x8x8x8xf32>
    %46 = vector.extract_strided_slice %1 {offsets = [1, 0], sizes = [1, 8], strides = [1, 1]} : vector<2x8xf32> to vector<1x8xf32>
    %47 = vector.shape_cast %46 : vector<1x8xf32> to vector<8xf32>
    %48 = vector.shape_cast %47 : vector<8xf32> to vector<1x1x1x8xf32>
    %49 = vector.broadcast %48 : vector<1x1x1x8xf32> to vector<2x8x8x8xf32>
    %50 = arith.addf %45, %49 : vector<2x8x8x8xf32>
    %51 = arith.addf %50, %16 : vector<2x8x8x8xf32>
    %cst_17 = arith.constant 0.000000e+00 : f32
    %52 = vector.broadcast %cst_17 : f32 to vector<2x8x8x8xf32>
    %53 = arith.maximumf %51, %52 : vector<2x8x8x8xf32>
    %c0_18 = arith.constant 0 : index
    %c0_19 = arith.constant 0 : index
    %c0_20 = arith.constant 0 : index
    %c0_21 = arith.constant 0 : index
    %54 = vector.load %arg5[%c0_18, %c0_19, %c0_20, %c0_21] : memref<2x8x8x8xf32, #tpu.memory_space<vmem>>, vector<2x8x8x8xf32>
    tpu.vector_store %arg5[%c0_18, %c0_19, %c0_20, %c0_21], %53 {strides = array<i32>} : memref<2x8x8x8xf32, #tpu.memory_space<vmem>>, vector<2x8x8x8xf32>,
    return
  }
  func.func @transform_0(%arg0: i32) -> (i32, i32, i32, i32) {
    %c0_i32 = arith.constant 0 : i32
    %c0_i32_0 = arith.constant 0 : i32
    %c0_i32_1 = arith.constant 0 : i32
    %c0_i32_2 = arith.constant 0 : i32
    return %arg0, %c0_i32, %c0_i32_0, %c0_i32_1 : i32, i32, i32, i32
  }
  func.func @transform_1(%arg0: i32) -> (i32, i32) {
    %c0_i32 = arith.constant 0 : i32
    %c0_i32_0 = arith.constant 0 : i32
    %c0_i32_1 = arith.constant 0 : i32
    return %c0_i32, %c0_i32_0 : i32, i32
  }
  func.func @transform_2(%arg0: i32) -> (i32, i32) {
    %c0_i32 = arith.constant 0 : i32
    %c0_i32_0 = arith.constant 0 : i32
    %c0_i32_1 = arith.constant 0 : i32
    return %c0_i32, %c0_i32_0 : i32, i32
  }
  func.func @transform_3(%arg0: i32) -> (i32, i32) {
    %c0_i32 = arith.constant 0 : i32
    %c0_i32_0 = arith.constant 0 : i32
    %c0_i32_1 = arith.constant 0 : i32
    return %c0_i32, %c0_i32_0 : i32, i32
  }
  func.func @transform_4(%arg0: i32) -> (i32, i32, i32, i32) {
    %c0_i32 = arith.constant 0 : i32
    %c0_i32_0 = arith.constant 0 : i32
    %c0_i32_1 = arith.constant 0 : i32
    %c0_i32_2 = arith.constant 0 : i32
    return %arg0, %c0_i32, %c0_i32_0, %c0_i32_1 : i32, i32, i32, i32
  }
}

module attributes {stable_mosaic.version = 11 : i64} {
  func.func @_block_identity_kernel(%arg0: i32, %arg1: memref<2x8x8x8xf32, #tpu.memory_space<vmem>>, %arg2: memref<24x24xf32, #tpu.memory_space<vmem>>, %arg3: memref<24x24xf32, #tpu.memory_space<vmem>>, %arg4: memref<2x8xf32, #tpu.memory_space<vmem>>, %arg5: memref<2x8x8x8xf32, #tpu.memory_space<vmem>>) attributes {dimension_semantics = [#tpu.dimension_semantics<parallel>], iteration_bounds = array<i64: 1>, scalar_prefetch = 0 : i64, scratch_operands = 0 : i64, tpu.core_type = #tpu.core_type<tc>, window_params = [{transform_indices = @transform_0, window_bounds = array<i64: 2, 8, 8, 8>}, {pipeline_mode = #tpu.pipeline_mode<synchronous>, transform_indices = @transform_1, window_bounds = array<i64: 24, 24>}, {pipeline_mode = #tpu.pipeline_mode<synchronous>, transform_indices = @transform_2, window_bounds = array<i64: 24, 24>}, {pipeline_mode = #tpu.pipeline_mode<synchronous>, transform_indices = @transform_3, window_bounds = array<i64: 2, 8>}, {transform_indices = @transform_4, window_bounds = array<i64: 2, 8, 8, 8>}]} {
    %c0 = arith.constant 0 : index
    %c0_0 = arith.constant 0 : index
    %c0_1 = arith.constant 0 : index
    %c0_2 = arith.constant 0 : index
    %0 = vector.load %arg1[%c0, %c0_0, %c0_1, %c0_2] : memref<2x8x8x8xf32, #tpu.memory_space<vmem>>, vector<2x8x8x8xf32>
    %c0_3 = arith.constant 0 : index
    %c0_4 = arith.constant 0 : index
    %1 = vector.load %arg4[%c0_3, %c0_4] : memref<2x8xf32, #tpu.memory_space<vmem>>, vector<2x8xf32>
    %c0_5 = arith.constant 0 : index
    %c0_6 = arith.constant 0 : index
    %2 = vector.load %arg2[%c0_5, %c0_6] : memref<24x24xf32, #tpu.memory_space<vmem>>, vector<24x24xf32>
    %cst = arith.constant 0.000000e+00 : f32
    %3 = vector.broadcast %cst : f32 to vector<2x8x1x8xf32>
    %4 = vector.extract_strided_slice %0 {offsets = [0, 0, 0, 0], sizes = [2, 8, 7, 8], strides = [1, 1, 1, 1]} : vector<2x8x8x8xf32> to vector<2x8x7x8xf32>
    %5 = tpu.concatenate %3, %4 in 2 : vector<2x8x1x8xf32>, vector<2x8x7x8xf32> -> vector<2x8x8x8xf32>
    %cst_7 = arith.constant 0.000000e+00 : f32
    %6 = vector.broadcast %cst_7 : f32 to vector<2x8x1x8xf32>
    %7 = vector.extract_strided_slice %0 {offsets = [0, 0, 1, 0], sizes = [2, 8, 7, 8], strides = [1, 1, 1, 1]} : vector<2x8x8x8xf32> to vector<2x8x7x8xf32>
    %8 = tpu.concatenate %7, %6 in 2 : vector<2x8x7x8xf32>, vector<2x8x1x8xf32> -> vector<2x8x8x8xf32>
    %9 = tpu.concatenate %5, %0, %8 in 3 : vector<2x8x8x8xf32>, vector<2x8x8x8xf32>, vector<2x8x8x8xf32> -> vector<2x8x8x24xf32>
    %10 = vector.shape_cast %9 : vector<2x8x8x24xf32> to vector<128x24xf32>
    %cst_8 = arith.constant dense<0.000000e+00> : vector<128x24xf32>
    %11 = tpu.matmul %10, %2, %cst_8 {dimension_numbers = #tpu.dot_dimension_numbers<[1], [0], [0], [1], [0, 0, 1, 1], [], []>} : vector<128x24xf32>, vector<24x24xf32>, vector<128x24xf32> -> vector<128x24xf32>
    %12 = vector.shape_cast %11 : vector<128x24xf32> to vector<2x8x8x24xf32>
    %13 = vector.extract_strided_slice %12 {offsets = [0, 0, 0, 0], sizes = [2, 8, 8, 8], strides = [1, 1, 1, 1]} : vector<2x8x8x24xf32> to vector<2x8x8x8xf32>
    %cst_9 = arith.constant 0.000000e+00 : f32
    %14 = vector.broadcast %cst_9 : f32 to vector<2x1x8x8xf32>
    %15 = vector.extract_strided_slice %13 {offsets = [0, 0, 0, 0], sizes = [2, 7, 8, 8], strides = [1, 1, 1, 1]} : vector<2x8x8x8xf32> to vector<2x7x8x8xf32>
    %16 = tpu.concatenate %14, %15 in 1 : vector<2x1x8x8xf32>, vector<2x7x8x8xf32> -> vector<2x8x8x8xf32>
    %17 = vector.extract_strided_slice %12 {offsets = [0, 0, 0, 8], sizes = [2, 8, 8, 8], strides = [1, 1, 1, 1]} : vector<2x8x8x24xf32> to vector<2x8x8x8xf32>
    %18 = arith.addf %16, %17 : vector<2x8x8x8xf32>
    %19 = vector.extract_strided_slice %12 {offsets = [0, 0, 0, 16], sizes = [2, 8, 8, 8], strides = [1, 1, 1, 1]} : vector<2x8x8x24xf32> to vector<2x8x8x8xf32>
    %cst_10 = arith.constant 0.000000e+00 : f32
    %20 = vector.broadcast %cst_10 : f32 to vector<2x1x8x8xf32>
    %21 = vector.extract_strided_slice %19 {offsets = [0, 1, 0, 0], sizes = [2, 7, 8, 8], strides = [1, 1, 1, 1]} : vector<2x8x8x8xf32> to vector<2x7x8x8xf32>
    %22 = tpu.concatenate %21, %20 in 1 : vector<2x7x8x8xf32>, vector<2x1x8x8xf32> -> vector<2x8x8x8xf32>
    %23 = arith.addf %18, %22 : vector<2x8x8x8xf32>
    %24 = vector.extract_strided_slice %1 {offsets = [0, 0], sizes = [1, 8], strides = [1, 1]} : vector<2x8xf32> to vector<1x8xf32>
    %25 = vector.shape_cast %24 : vector<1x8xf32> to vector<8xf32>
    %26 = vector.shape_cast %25 : vector<8xf32> to vector<1x1x1x8xf32>
    %27 = vector.broadcast %26 : vector<1x1x1x8xf32> to vector<2x8x8x8xf32>
    %28 = arith.addf %23, %27 : vector<2x8x8x8xf32>
    %cst_11 = arith.constant 0.000000e+00 : f32
    %29 = vector.broadcast %cst_11 : f32 to vector<2x8x8x8xf32>
    %30 = arith.maximumf %28, %29 : vector<2x8x8x8xf32>
    %c0_12 = arith.constant 0 : index
    %c0_13 = arith.constant 0 : index
    %31 = vector.load %arg3[%c0_12, %c0_13] : memref<24x24xf32, #tpu.memory_space<vmem>>, vector<24x24xf32>
    %cst_14 = arith.constant 0.000000e+00 : f32
    %32 = vector.broadcast %cst_14 : f32 to vector<2x8x1x8xf32>
    %33 = vector.extract_strided_slice %30 {offsets = [0, 0, 0, 0], sizes = [2, 8, 7, 8], strides = [1, 1, 1, 1]} : vector<2x8x8x8xf32> to vector<2x8x7x8xf32>
    %34 = tpu.concatenate %32, %33 in 2 : vector<2x8x1x8xf32>, vector<2x8x7x8xf32> -> vector<2x8x8x8xf32>
    %cst_15 = arith.constant 0.000000e+00 : f32
    %35 = vector.broadcast %cst_15 : f32 to vector<2x8x1x8xf32>
    %36 = vector.extract_strided_slice %30 {offsets = [0, 0, 1, 0], sizes = [2, 8, 7, 8], strides = [1, 1, 1, 1]} : vector<2x8x8x8xf32> to vector<2x8x7x8xf32>
    %37 = tpu.concatenate %36, %35 in 2 : vector<2x8x7x8xf32>, vector<2x8x1x8xf32> -> vector<2x8x8x8xf32>
    %38 = tpu.concatenate %34, %30, %37 in 3 : vector<2x8x8x8xf32>, vector<2x8x8x8xf32>, vector<2x8x8x8xf32> -> vector<2x8x8x24xf32>
    %39 = vector.shape_cast %38 : vector<2x8x8x24xf32> to vector<128x24xf32>
    %cst_16 = arith.constant dense<0.000000e+00> : vector<128x24xf32>
    %40 = tpu.matmul %39, %31, %cst_16 {dimension_numbers = #tpu.dot_dimension_numbers<[1], [0], [0], [1], [0, 0, 1, 1], [], []>} : vector<128x24xf32>, vector<24x24xf32>, vector<128x24xf32> -> vector<128x24xf32>
    %41 = vector.shape_cast %40 : vector<128x24xf32> to vector<2x8x8x24xf32>
    %42 = vector.extract_strided_slice %41 {offsets = [0, 0, 0, 0], sizes = [2, 8, 8, 8], strides = [1, 1, 1, 1]} : vector<2x8x8x24xf32> to vector<2x8x8x8xf32>
    %cst_17 = arith.constant 0.000000e+00 : f32
    %43 = vector.broadcast %cst_17 : f32 to vector<2x1x8x8xf32>
    %44 = vector.extract_strided_slice %42 {offsets = [0, 0, 0, 0], sizes = [2, 7, 8, 8], strides = [1, 1, 1, 1]} : vector<2x8x8x8xf32> to vector<2x7x8x8xf32>
    %45 = tpu.concatenate %43, %44 in 1 : vector<2x1x8x8xf32>, vector<2x7x8x8xf32> -> vector<2x8x8x8xf32>
    %46 = vector.extract_strided_slice %41 {offsets = [0, 0, 0, 8], sizes = [2, 8, 8, 8], strides = [1, 1, 1, 1]} : vector<2x8x8x24xf32> to vector<2x8x8x8xf32>
    %47 = arith.addf %45, %46 : vector<2x8x8x8xf32>
    %48 = vector.extract_strided_slice %41 {offsets = [0, 0, 0, 16], sizes = [2, 8, 8, 8], strides = [1, 1, 1, 1]} : vector<2x8x8x24xf32> to vector<2x8x8x8xf32>
    %cst_18 = arith.constant 0.000000e+00 : f32
    %49 = vector.broadcast %cst_18 : f32 to vector<2x1x8x8xf32>
    %50 = vector.extract_strided_slice %48 {offsets = [0, 1, 0, 0], sizes = [2, 7, 8, 8], strides = [1, 1, 1, 1]} : vector<2x8x8x8xf32> to vector<2x7x8x8xf32>
    %51 = tpu.concatenate %50, %49 in 1 : vector<2x7x8x8xf32>, vector<2x1x8x8xf32> -> vector<2x8x8x8xf32>
    %52 = arith.addf %47, %51 : vector<2x8x8x8xf32>
    %53 = vector.extract_strided_slice %1 {offsets = [1, 0], sizes = [1, 8], strides = [1, 1]} : vector<2x8xf32> to vector<1x8xf32>
    %54 = vector.shape_cast %53 : vector<1x8xf32> to vector<8xf32>
    %55 = vector.shape_cast %54 : vector<8xf32> to vector<1x1x1x8xf32>
    %56 = vector.broadcast %55 : vector<1x1x1x8xf32> to vector<2x8x8x8xf32>
    %57 = arith.addf %52, %56 : vector<2x8x8x8xf32>
    %58 = arith.addf %57, %0 : vector<2x8x8x8xf32>
    %cst_19 = arith.constant 0.000000e+00 : f32
    %59 = vector.broadcast %cst_19 : f32 to vector<2x8x8x8xf32>
    %60 = arith.maximumf %58, %59 : vector<2x8x8x8xf32>
    %c0_20 = arith.constant 0 : index
    %c0_21 = arith.constant 0 : index
    %c0_22 = arith.constant 0 : index
    %c0_23 = arith.constant 0 : index
    %61 = vector.load %arg5[%c0_20, %c0_21, %c0_22, %c0_23] : memref<2x8x8x8xf32, #tpu.memory_space<vmem>>, vector<2x8x8x8xf32>
    tpu.vector_store %arg5[%c0_20, %c0_21, %c0_22, %c0_23], %60 {strides = array<i32>} : memref<2x8x8x8xf32, #tpu.memory_space<vmem>>, vector<2x8x8x8xf32>,
    return
  }
  func.func @transform_0(%arg0: i32) -> (i32, i32, i32, i32) {
    %c0_i32 = arith.constant 0 : i32
    %c0_i32_0 = arith.constant 0 : i32
    %c0_i32_1 = arith.constant 0 : i32
    %c0_i32_2 = arith.constant 0 : i32
    return %arg0, %c0_i32, %c0_i32_0, %c0_i32_1 : i32, i32, i32, i32
  }
  func.func @transform_1(%arg0: i32) -> (i32, i32) {
    %c0_i32 = arith.constant 0 : i32
    %c0_i32_0 = arith.constant 0 : i32
    %c0_i32_1 = arith.constant 0 : i32
    return %c0_i32, %c0_i32_0 : i32, i32
  }
  func.func @transform_2(%arg0: i32) -> (i32, i32) {
    %c0_i32 = arith.constant 0 : i32
    %c0_i32_0 = arith.constant 0 : i32
    %c0_i32_1 = arith.constant 0 : i32
    return %c0_i32, %c0_i32_0 : i32, i32
  }
  func.func @transform_3(%arg0: i32) -> (i32, i32) {
    %c0_i32 = arith.constant 0 : i32
    %c0_i32_0 = arith.constant 0 : i32
    %c0_i32_1 = arith.constant 0 : i32
    return %c0_i32, %c0_i32_0 : i32, i32
  }
  func.func @transform_4(%arg0: i32) -> (i32, i32, i32, i32) {
    %c0_i32 = arith.constant 0 : i32
    %c0_i32_0 = arith.constant 0 : i32
    %c0_i32_1 = arith.constant 0 : i32
    %c0_i32_2 = arith.constant 0 : i32
    return %arg0, %c0_i32, %c0_i32_0, %c0_i32_1 : i32, i32, i32, i32
  }
}

</mosaic_0001>

<bundles_post_ra>
// kernel: _lambda_.3
= control target key start
LH: loop header
LB: loop body
LE: loop exit
PB: predicated region body
PF: predicated region fallthrough
CT: control target
= control target key end

     0   :  { %vm134_vm0 = vcmask 1046528   ;;  %s1490_s19 = smov 8   ;;  %s1491_s22 = smov 16   ;;  %v1492_v52 = vmov 0.0   ;;  %vm85_vm1 = vcmask 1040384   ;;  %vm263_vm2 = vcmask 64512   ;;  %s2323_s0 = inlined_call_operand.vmem [shape: f32[2,8,8,8], index: 0, kind: input, shape index: {}]   ;;  %s2324_s1 = inlined_call_operand.vmem [shape: f32[24,24], index: 1, kind: input, shape index: {}]   ;;  %s2325_s3 = inlined_call_operand.vmem [shape: f32[2,8], index: 3, kind: input, shape index: {}]   ;;  %s2326_s2 = inlined_call_operand.vmem [shape: f32[24,24], index: 2, kind: input, shape index: {}]   ;;  %s2327_s4 = inlined_call_operand.vmem [shape: f32[2,8,8,8], index: 4, kind: output, shape index: {}]  }
   0x1   :  { %v1523_v0 = vld [vmem:[%s2323_s0] sm:$0xff]  ;;  %v1528_v1 = vld [vmem:[%s2323_s0 + $0x8] sm:$0xff]  ;;  %v1538_v5 = vld [vmem:[%s2323_s0 + $0x10] sm:$0xff]  ;;  %s1493_s30 = smov 112   ;;  %vm280_vm3 = vcmask 130048   ;;  %vm297_vm4 = vcmask 195584  }
   0x2   :  { %151 = vrot.lane.b32.xlu0 %v1523_v0, %s1490_s19  ;;  %v102_v2 = vrot.slane %v1523_v0, 1  ;;  %v103_v3 = vrot.slane %v1528_v1, 1  ;;  %v1547_v7 = vld [vmem:[%s2323_s0 + $0x18] sm:$0xff]  ;;  %v104_v8 = vrot.slane %v1538_v5, 1  ;;  %v34_v9 = vld [vmem:[%s2324_s1] sm:$0xff]  ;;  %v35_v10 = vld [vmem:[%s2324_s1 + $0x8] sm:$0xff] }
   0x3   :  { %v105_v11 = vrot.slane %v1547_v7, 1  ;;  %v1461_v12 = vpack.c.bf16 %v35_v10, %v34_v9  ;;  %v36_v14 = vld [vmem:[%s2324_s1 + $0x10] sm:$0xff]  ;;  %v1567_v15 = vld [vmem:[%s2323_s0 + $0x20] sm:$0xff]  ;;  %v1576_v17 = vld [vmem:[%s2323_s0 + $0x28] sm:$0xff]  ;;  %v53_v53 = vrot.slane %v1523_v0, 7  ;;  %v54_v55 = vrot.slane %v1528_v1, 7 }
   0x4   :  { %v135_v4 = vsel %vm134_vm0, %v102_v2, 0.0  ;;  %v136_v6 = vsel %vm134_vm0, %v103_v3, 0.0  ;;  %v137_v13 = vsel %vm134_vm0, %v104_v8, 0.0  ;;  %v106_v18 = vrot.slane %v1567_v15, 1  ;;  %v1587_v21 = vld [vmem:[%s2323_s0 + $0x30] sm:$0xff]  ;;  %v1596_v23 = vld [vmem:[%s2323_s0 + $0x38] sm:$0xff] }
   0x5   :  { %215 = vrot.lane.b32.xlu1 %v135_v4, %s1491_s22  ;;  %1462 = vmatprep.subr.bf16.mxu0 %v1461_v12  ;;  %v138_v16 = vsel %vm134_vm0, %v105_v11, 0.0  ;;  %v107_v19 = vrot.slane %v1576_v17, 1  ;;  %v108_v24 = vrot.slane %v1587_v21, 1  ;;  %v109_v25 = vrot.slane %v1596_v23, 1  ;;  %v1607_v27 = vld [vmem:[%s2323_s0 + $0x40] sm:$0xff]  ;;  %v1616_v29 = vld [vmem:[%s2323_s0 + $0x48] sm:$0xff] }
   0x6   :  { %153 = vrot.lane.b32.xlu0 %v1528_v1, %s1490_s19  ;;  %1464 = vmatpush3.bf16.msra.mxu0 %v1461_v12  ;;  %v139_v20 = vsel %vm134_vm0, %v106_v18, 0.0  ;;  %v110_v30 = vrot.slane %v1607_v27, 1  ;;  %v111_v31 = vrot.slane %v1616_v29, 1  ;;  %v1627_v33 = vld [vmem:[%s2323_s0 + $0x50] sm:$0xff]  ;;  %v1636_v35 = vld [vmem:[%s2323_s0 + $0x58] sm:$0xff]  ;;  %v1647_v39 = vld [vmem:[%s2323_s0 + $0x60] sm:$0xff] }
   0x7   :  { %1405 = vmatprep.subr.mxu0 %v36_v14  ;;  %v140_v22 = vsel %vm134_vm0, %v107_v19, 0.0  ;;  %v141_v26 = vsel %vm134_vm0, %v108_v24, 0.0  ;;  %v142_v28 = vsel %vm134_vm0, %v109_v25, 0.0  ;;  %v112_v36 = vrot.slane %v1627_v33, 1  ;;  %v1656_v41 = vld [vmem:[%s2323_s0 + $0x68] sm:$0xff]  ;;  %v1667_v45 = vld [vmem:[%s2323_s0 + $0x70] sm:$0xff] }
   0x8   :  { %v143_v32 = vsel %vm134_vm0, %v110_v30, 0.0  ;;  %v144_v34 = vsel %vm134_vm0, %v111_v31, 0.0  ;;  %v113_v37 = vrot.slane %v1636_v35, 1  ;;  %v114_v42 = vrot.slane %v1647_v39, 1  ;;  %v1676_v47 = vld [vmem:[%s2323_s0 + $0x78] sm:$0xff]  ;;  %s1494_s5 = smov 120  }
   0x9   :  { %217 = vrot.lane.b32.xlu1 %v136_v6, %s1491_s22  ;;  %v145_v38 = vsel %vm134_vm0, %v112_v36, 0.0  ;;  %v115_v43 = vrot.slane %v1656_v41, 1  ;;  %v116_v48 = vrot.slane %v1667_v45, 1  ;;  %v117_v49 = vrot.slane %v1676_v47, 1 }
   0xa   :  { %155 = vrot.lane.b32.xlu0 %v1538_v5, %s1490_s19  ;;  %1406 = vmatpush3.msra.mxu0 %v36_v14  ;;  %v146_v40 = vsel %vm134_vm0, %v113_v37, 0.0  ;;  %v147_v44 = vsel %vm134_vm0, %v114_v42, 0.0  ;;  %v86_v54 = vsel %vm85_vm1, 0.0, %v53_v53  ;;  %v87_v58 = vsel %vm85_vm1, 0.0, %v54_v55 }
   0xb   :  { %v148_v46 = vsel %vm134_vm0, %v115_v43, 0.0  ;;  %v149_v50 = vsel %vm134_vm0, %v116_v48, 0.0  ;;  %v150_v51 = vsel %vm134_vm0, %v117_v49, 0.0  ;;  %v55_v60 = vrot.slane %v1538_v5, 7 }
   0xc   :  { %v56_v4 = vrot.slane %v1547_v7, 7  ;;  %v57_v8 = vrot.slane %v1567_v15, 7  ;;  %v58_v18 = vrot.slane %v1576_v17, 7  ;;  %v61_v36 = vrot.slane %v1607_v27, 7 }
   0xd   :  { %157 = vrot.lane.b32.xlu1 %v1547_v7, %s1490_s19  ;;  %v88_v1 = vsel %vm85_vm1, 0.0, %v55_v60  ;;  %v62_v42 = vrot.slane %v1616_v29, 7 }
   0xe   :  { %219 = vrot.lane.b32.xlu0 %v137_v13, %s1491_s22  ;;  %v89_v9 = vsel %vm85_vm1, 0.0, %v56_v4  ;;  %v90_v14 = vsel %vm85_vm1, 0.0, %v57_v8  ;;  %v67_v8 = vrot.slane %v1667_v45, 7 }
   0xf   :  { %v95_v49 = vsel %vm85_vm1, 0.0, %v62_v42 }
  0x11   :  { %221 = vrot.lane.b32.xlu1 %v138_v16, %s1491_s22 }
  0x12   :  { %159 = vrot.lane.b32.xlu0 %v1567_v15, %s1490_s19 }
  0x15   :  { %161 = vrot.lane.b32.xlu1 %v1576_v17, %s1490_s19 }
  0x16   :  { %223 = vrot.lane.b32.xlu0 %v139_v20, %s1491_s22  ;;  %v59_v20 = vrot.slane %v1587_v21, 7 }
  0x18   :  { %v92_v30 = vsel %vm85_vm1, 0.0, %v59_v20 }
  0x19   :  { %225 = vrot.lane.b32.xlu1 %v140_v22, %s1491_s22  ;;  %v91_v22 = vsel %vm85_vm1, 0.0, %v58_v18 }
  0x1a   :  { %163 = vrot.lane.b32.xlu0 %v1587_v21, %s1490_s19 }
  0x1d   :  { %165 = vrot.lane.b32.xlu1 %v1596_v23, %s1490_s19 }
  0x1e   :  { %227 = vrot.lane.b32.xlu0 %v141_v26, %s1491_s22 }
  0x21   :  { %229 = vrot.lane.b32.xlu1 %v142_v28, %s1491_s22 }
  0x22   :  { %167 = vrot.lane.b32.xlu0 %v1607_v27, %s1490_s19 }
  0x25   :  { %169 = vrot.lane.b32.xlu1 %v1616_v29, %s1490_s19 }
  0x26   :  { %231 = vrot.lane.b32.xlu0 %v143_v32, %s1491_s22  ;;  %v60_v32 = vrot.slane %v1596_v23, 7  ;;  %v94_v23 = vsel %vm85_vm1, 0.0, %v61_v36 }
  0x28   :  { %v93_v37 = vsel %vm85_vm1, 0.0, %v60_v32 }
  0x29   :  { %233 = vrot.lane.b32.xlu1 %v144_v34, %s1491_s22 }
  0x2a   :  { %171 = vrot.lane.b32.xlu0 %v1627_v33, %s1490_s19 }
  0x2d   :  { %173 = vrot.lane.b32.xlu1 %v1636_v35, %s1490_s19 }
  0x2e   :  { %235 = vrot.lane.b32.xlu0 %v145_v38, %s1491_s22 }
  0x31   :  { %237 = vrot.lane.b32.xlu1 %v146_v40, %s1491_s22 }
  0x32   :  { %175 = vrot.lane.b32.xlu0 %v1647_v39, %s1490_s19 }
  0x35   :  { %177 = vrot.lane.b32.xlu1 %v1656_v41, %s1490_s19 }
  0x36   :  { %239 = vrot.lane.b32.xlu0 %v147_v44, %s1491_s22 }
  0x39   :  { %241 = vrot.lane.b32.xlu1 %v148_v46, %s1491_s22 }
  0x3a   :  { %179 = vrot.lane.b32.xlu0 %v1667_v45, %s1490_s19 }
  0x3d   :  { %181 = vrot.lane.b32.xlu1 %v1676_v47, %s1490_s19 }
  0x3e   :  { %243 = vrot.lane.b32.xlu0 %v149_v50, %s1491_s22 }
  0x41   :  { %245 = vrot.lane.b32.xlu1 %v150_v51, %s1491_s22  ;;  %v63_v51 = vrot.slane %v1627_v33, 7 }
  0x45   :  { %586 = vrot.lane.b32.xlu1 %v1492_v52, %s1493_s30 }
  0x74   :  { %v152_v56 = vpop.permute.xlu0 %151 }
  0x75   :  { %v264_v57 = vsel %vm263_vm2, %v86_v54, %v152_v56  ;;  %v64_v54 = vrot.slane %v1636_v35, 7  ;;  %v96_v56 = vsel %vm85_vm1, 0.0, %v63_v51  ;;  %v669_v51 = vld [vmem:[%s2326_s2] sm:$0xff] }
  0x77   :  { %v216_v59 = vpop.permute.xlu1 %215  ;;  %v97_v33 = vsel %vm85_vm1, 0.0, %v64_v54 }
  0x78   :  { %v154_v61 = vpop.permute.xlu0 %153  ;;  %v281_v62 = vsel %vm280_vm3, %v264_v57, %v216_v59 }
  0x79   :  { %v265_v63 = vsel %vm263_vm2, %v87_v58, %v154_v61  ;;  %1407 = vmatprep.mubr.msk.f32.mxu0 %vm297_vm4, %v281_v62  ;;  %v65_v61 = vrot.slane %v1647_v39, 7 }
  0x7b   :  { %v218_v0 = vpop.permute.xlu1 %217 }
  0x7c   :  { %v282_v2 = vsel %vm280_vm3, %v265_v63, %v218_v0  ;;  %v156_v3 = vpop.permute.xlu0 %155  ;;  %v66_v0 = vrot.slane %v1656_v41, 7 }
  0x7d   :  { %1408 = vmatmul.mubr.msk.f32.vlgmr.msra.gmra.mrb[0].mxu0 %vm297_vm4, %v282_v2  ;;  %v266_v6 = vsel %vm263_vm2, %v88_v1, %v156_v3  ;;  %v98_v2 = vsel %vm85_vm1, 0.0, %v65_v61 }
  0x7e   :  { %v99_v39 = vsel %vm85_vm1, 0.0, %v66_v0 }
  0x7f   :  { %v158_v5 = vpop.permute.xlu1 %157 }
  0x80   :  { %v220_v10 = vpop.permute.xlu0 %219  ;;  %v267_v12 = vsel %vm263_vm2, %v89_v9, %v158_v5 }
  0x81   :  { %v283_v11 = vsel %vm280_vm3, %v266_v6, %v220_v10 }
  0x82   :  { %1410 = vmatprep.mubr.msk.f32.mxu0 %vm297_vm4, %v283_v11  ;;  %v68_v11 = vrot.slane %v1676_v47, 7 }
  0x83   :  { %v222_v13 = vpop.permute.xlu1 %221 }
  0x84   :  { %v284_v7 = vsel %vm280_vm3, %v267_v12, %v222_v13  ;;  %v160_v16 = vpop.permute.xlu0 %159  ;;  %v100_v13 = vsel %vm85_vm1, 0.0, %v67_v8  ;;  %v101_v45 = vsel %vm85_vm1, 0.0, %v68_v11 }
  0x85   :  { %1411 = vmatmul.mubr.msk.f32.gmra.mrb[2].mxu0 %vm297_vm4, %v284_v7  ;;  %v268_v15 = vsel %vm263_vm2, %v90_v14, %v160_v16 }
  0x87   :  { %v162_v19 = vpop.permute.xlu1 %161 }
  0x88   :  { %v224_v24 = vpop.permute.xlu0 %223  ;;  %v269_v26 = vsel %vm263_vm2, %v91_v22, %v162_v19 }
  0x89   :  { %v285_v25 = vsel %vm280_vm3, %v268_v15, %v224_v24 }
  0x8a   :  { %1413 = vmatprep.mubr.msk.f32.mxu0 %vm297_vm4, %v285_v25 }
  0x8b   :  { %v226_v28 = vpop.permute.xlu1 %225 }
  0x8c   :  { %v286_v17 = vsel %vm280_vm3, %v269_v26, %v226_v28  ;;  %v164_v31 = vpop.permute.xlu0 %163 }
  0x8d   :  { %1414 = vmatmul.mubr.msk.f32.gmra.mrb[4].mxu0 %vm297_vm4, %v286_v17  ;;  %v270_v21 = vsel %vm263_vm2, %v92_v30, %v164_v31 }
  0x8f   :  { %v166_v34 = vpop.permute.xlu1 %165 }
  0x90   :  { %v228_v38 = vpop.permute.xlu0 %227  ;;  %v271_v43 = vsel %vm263_vm2, %v93_v37, %v166_v34 }
  0x91   :  { %v287_v40 = vsel %vm280_vm3, %v270_v21, %v228_v38 }
  0x92   :  { %1416 = vmatprep.mubr.msk.f32.mxu0 %vm297_vm4, %v287_v40 }
  0x93   :  { %v230_v44 = vpop.permute.xlu1 %229 }
  0x94   :  { %v288_v46 = vsel %vm280_vm3, %v271_v43, %v230_v44  ;;  %v168_v48 = vpop.permute.xlu0 %167  ;;  %v633_v44 = vlaneseq }
  0x95   :  { %1417 = vmatmul.mubr.msk.f32.gmra.mrb[6].mxu0 %vm297_vm4, %v288_v46  ;;  %v272_v27 = vsel %vm263_vm2, %v94_v23, %v168_v48 }
  0x96   :  { %v1854_v23 = vshrl.u32 %v633_v44, 7 }
  0x97   :  { %v170_v50 = vpop.permute.xlu1 %169 }
  0x98   :  { %v232_v52 = vpop.permute.xlu0 %231  ;;  %v273_v29 = vsel %vm263_vm2, %v95_v49, %v170_v50  ;;  %v635_v48 = vsub.s32 0, %v1854_v23  ;;  %v1862_v49 = vld [vmem:[%s2325_s3] sm:$0x3] }
  0x99   :  { %v289_v53 = vsel %vm280_vm3, %v272_v27, %v232_v52  ;;  %v670_v52 = vld [vmem:[%s2326_s2 + $0x8] sm:$0xff] }
  0x9a   :  { %1419 = vmatprep.mubr.msk.f32.mxu0 %vm297_vm4, %v289_v53  ;;  %v1865_v50 = vrot.slane %v1862_v49, %v635_v48  ;;  %v1465_v54 = vpack.c.bf16 %v670_v52, %v669_v51 }
  0x9b   :  { %v234_v55 = vpop.permute.xlu1 %233 }
  0x9c   :  { %v290_v57 = vsel %vm280_vm3, %v273_v29, %v234_v55  ;;  %v172_v58 = vpop.permute.xlu0 %171  ;;  %1466 = vmatprep.subr.bf16.mxu1 %v1465_v54 }
  0x9d   :  { %1420 = vmatmul.mubr.msk.f32.gmra.mrb[8].mxu0 %vm297_vm4, %v290_v57  ;;  %v274_v59 = vsel %vm263_vm2, %v96_v56, %v172_v58  ;;  %1468 = vmatpush3.bf16.msra.mxu1 %v1465_v54 }
  0x9f   :  { %v174_v60 = vpop.permute.xlu1 %173 }
  0xa0   :  { %v236_v62 = vpop.permute.xlu0 %235  ;;  %v275_v63 = vsel %vm263_vm2, %v97_v33, %v174_v60 }
  0xa1   :  { %v291_v35 = vsel %vm280_vm3, %v274_v59, %v236_v62  ;;  %v671_v59 = vld [vmem:[%s2326_s2 + $0x10] sm:$0xff] }
  0xa2   :  { %1422 = vmatprep.mubr.msk.f32.mxu0 %vm297_vm4, %v291_v35  ;;  %1435 = vmatprep.subr.mxu1 %v671_v59 }
  0xa3   :  { %v238_v1 = vpop.permute.xlu1 %237  ;;  %1436 = vmatpush3.msra.mxu1 %v671_v59 }
  0xa4   :  { %v292_v3 = vsel %vm280_vm3, %v275_v63, %v238_v1  ;;  %v176_v4 = vpop.permute.xlu0 %175 }
  0xa5   :  { %1423 = vmatmul.mubr.msk.f32.gmra.mrb[10].mxu0 %vm297_vm4, %v292_v3  ;;  %v276_v6 = vsel %vm263_vm2, %v98_v2, %v176_v4 }
  0xa7   :  { %v178_v5 = vpop.permute.xlu1 %177 }
  0xa8   :  { %v240_v9 = vpop.permute.xlu0 %239  ;;  %v277_v10 = vsel %vm263_vm2, %v99_v39, %v178_v5 }
  0xa9   :  { %v293_v41 = vsel %vm280_vm3, %v276_v6, %v240_v9 }
  0xaa   :  { %1425 = vmatprep.mubr.msk.f32.mxu0 %vm297_vm4, %v293_v41 }
  0xab   :  { %v242_v12 = vpop.permute.xlu1 %241 }
  0xac   :  { %v294_v14 = vsel %vm280_vm3, %v277_v10, %v242_v12  ;;  %v180_v7 = vpop.permute.xlu0 %179 }
  0xad   :  { %1426 = vmatmul.mubr.msk.f32.gmra.mrb[12].mxu0 %vm297_vm4, %v294_v14  ;;  %v278_v16 = vsel %vm263_vm2, %v100_v13, %v180_v7 }
  0xaf   :  { %v182_v18 = vpop.permute.xlu1 %181 }
  0xb0   :  { %v244_v15 = vpop.permute.xlu0 %243  ;;  %v279_v19 = vsel %vm263_vm2, %v101_v45, %v182_v18 }
  0xb1   :  { %v295_v20 = vsel %vm280_vm3, %v278_v16, %v244_v15 }
  0xb2   :  { %1428 = vmatprep.mubr.msk.f32.mxu0 %vm297_vm4, %v295_v20 }
  0xb3   :  { %v246_v47 = vpop.permute.xlu1 %245 }
  0xb4   :  { %v296_v22 = vsel %vm280_vm3, %v279_v19, %v246_v47 }
  0xb5   :  { %1429 = vmatmul.mubr.msk.f32.gmra.mrb[14].mxu0 %vm297_vm4, %v296_v22 }
  0xb7   :  { %v1856_v46 = vpop.permute.xlu1 %586 }
 0x150   :  { %v1770_v24 = vpop.f32.mrb[0].mxu0 }
 0x151   :  { %509 = vrot.lane.b32.xlu0 %v1770_v24, %s1494_s5  ;;  %v1774_v25 = vpop.f32.mrb[1].mxu0 }
 0x152   :  { %507 = vrot.lane.b32.xlu1 %v1774_v25, %s1494_s5 }
 0x155   :  { %572 = vrot.lane.b32.xlu0 %v1770_v24, %s1493_s30 }
 0x158   :  { %v1780_v26 = vpop.f32.mrb[2].mxu0 }
 0x159   :  { %576 = vrot.lane.b32.xlu0 %v1780_v26, %s1493_s30  ;;  %513 = vrot.lane.b32.xlu1 %v1780_v26, %s1494_s5  ;;  %v1786_v28 = vpop.f32.mrb[3].mxu0 }
 0x15d   :  { %511 = vrot.lane.b32.xlu0 %v1786_v28, %s1494_s5  ;;  %574 = vrot.lane.b32.xlu1 %v1786_v28, %s1493_s30 }
 0x160   :  { %v1792_v30 = vpop.f32.mrb[4].mxu0 }
 0x161   :  { %580 = vrot.lane.b32.xlu0 %v1792_v30, %s1493_s30  ;;  %517 = vrot.lane.b32.xlu1 %v1792_v30, %s1494_s5  ;;  %v1798_v17 = vpop.f32.mrb[5].mxu0 }
 0x165   :  { %515 = vrot.lane.b32.xlu0 %v1798_v17, %s1494_s5  ;;  %578 = vrot.lane.b32.xlu1 %v1798_v17, %s1493_s30 }
 0x168   :  { %v1418_v31 = vpop.f32.mrb[6].mxu0 }
 0x169   :  { %584 = vrot.lane.b32.xlu0 %v1418_v31, %s1493_s30  ;;  %521 = vrot.lane.b32.xlu1 %v1418_v31, %s1494_s5  ;;  %v1806_v32 = vpop.f32.mrb[7].mxu0 }
 0x16d   :  { %519 = vrot.lane.b32.xlu0 %v1806_v32, %s1494_s5  ;;  %582 = vrot.lane.b32.xlu1 %v1806_v32, %s1493_s30 }
 0x170   :  { %v1812_v21 = vpop.f32.mrb[8].mxu0 }
 0x171   :  { %525 = vrot.lane.b32.xlu0 %v1812_v21, %s1494_s5  ;;  %v1816_v34 = vpop.f32.mrb[9].mxu0 }
 0x172   :  { %523 = vrot.lane.b32.xlu1 %v1816_v34, %s1494_s5 }
 0x175   :  { %588 = vrot.lane.b32.xlu0 %v1812_v21, %s1493_s30 }
 0x178   :  { %v1822_v36 = vpop.f32.mrb[10].mxu0 }
 0x179   :  { %592 = vrot.lane.b32.xlu0 %v1822_v36, %s1493_s30  ;;  %529 = vrot.lane.b32.xlu1 %v1822_v36, %s1494_s5  ;;  %v1828_v37 = vpop.f32.mrb[11].mxu0 }
 0x17d   :  { %527 = vrot.lane.b32.xlu0 %v1828_v37, %s1494_s5  ;;  %590 = vrot.lane.b32.xlu1 %v1828_v37, %s1493_s30 }
 0x180   :  { %v1834_v38 = vpop.f32.mrb[12].mxu0 }
 0x181   :  { %596 = vrot.lane.b32.xlu0 %v1834_v38, %s1493_s30  ;;  %533 = vrot.lane.b32.xlu1 %v1834_v38, %s1494_s5  ;;  %v1840_v40 = vpop.f32.mrb[13].mxu0 }
 0x185   :  { %531 = vrot.lane.b32.xlu0 %v1840_v40, %s1494_s5  ;;  %594 = vrot.lane.b32.xlu1 %v1840_v40, %s1493_s30 }
 0x188   :  { %v1430_v42 = vpop.f32.mrb[14].mxu0 }
 0x189   :  { %v1846_v43 = vpop.f32.mrb[15].mxu0 }
 0x18a   :  { %535 = vrot.lane.b32.xlu0 %v1846_v43, %s1494_s5  ;;  %598 = vrot.lane.b32.xlu1 %v1846_v43, %s1493_s30 }
 0x18e   :  { %600 = vrot.lane.b32.xlu0 %v1430_v42, %s1493_s30  ;;  %537 = vrot.lane.b32.xlu1 %v1430_v42, %s1494_s5 }
 0x1c3   :  { %v510_v27 = vpop.permute.xlu0 %509 }
 0x1c4   :  { %v508_v29 = vpop.permute.xlu1 %507  ;;  %v556_v60 = vadd.f32 %v510_v27, %v1774_v25 }
 0x1c7   :  { %v573_v53 = vpop.permute.xlu0 %572 }
 0x1c8   :  { %v617_v55 = vadd.f32 %v573_v53, %v508_v29 }
 0x1ca   :  { %v637_v56 = vadd.f32 %v1865_v50, %v617_v55 }
 0x1cb   :  { %v577_v57 = vpop.permute.xlu0 %576  ;;  %v514_v58 = vpop.permute.xlu1 %513 }
 0x1cc   :  { %v1877_v33 = vmax.f32 %v637_v56, 0.0  ;;  %v558_v8 = vadd.f32 %v514_v58, %v1786_v28 }
 0x1ce   :  { %784 = vrot.lane.b32.xlu1 %v1877_v33, %s1490_s19  ;;  %v736_v61 = vrot.slane %v1877_v33, 1 }
 0x1cf   :  { %v512_v62 = vpop.permute.xlu0 %511  ;;  %v575_v63 = vpop.permute.xlu1 %574 }
 0x1d0   :  { %v557_v35 = vadd.f32 %v1770_v24, %v512_v62  ;;  %v618_v0 = vadd.f32 %v575_v63, %v556_v60  ;;  %v768_v1 = vsel %vm134_vm0, %v736_v61, 0.0 }
 0x1d2   :  { %v619_v2 = vadd.f32 %v577_v57, %v557_v35  ;;  %v638_v3 = vadd.f32 %v1865_v50, %v618_v0  ;;  %848 = vrot.lane.b32.xlu1 %v768_v1, %s1491_s22 }
 0x1d3   :  { %v581_v4 = vpop.permute.xlu0 %580  ;;  %v518_v6 = vpop.permute.xlu1 %517 }
 0x1d4   :  { %v1887_v39 = vmax.f32 %v638_v3, 0.0  ;;  %v639_v5 = vadd.f32 %v1865_v50, %v619_v2  ;;  %v560_v24 = vadd.f32 %v518_v6, %v1798_v17 }
 0x1d6   :  { %786 = vrot.lane.b32.xlu0 %v1887_v39, %s1490_s19  ;;  %v1893_v9 = vmax.f32 %v639_v5, 0.0  ;;  %v737_v10 = vrot.slane %v1887_v39, 1 }
 0x1d7   :  { %v516_v41 = vpop.permute.xlu0 %515  ;;  %v579_v11 = vpop.permute.xlu1 %578 }
 0x1d8   :  { %v559_v12 = vadd.f32 %v1780_v26, %v516_v41  ;;  %v620_v13 = vadd.f32 %v579_v11, %v558_v8  ;;  %788 = vrot.lane.b32.xlu1 %v1893_v9, %s1490_s19  ;;  %v769_v14 = vsel %vm134_vm0, %v737_v10, 0.0  ;;  %v738_v7 = vrot.slane %v1893_v9, 1 }
 0x1da   :  { %v621_v16 = vadd.f32 %v581_v4, %v559_v12  ;;  %v640_v45 = vadd.f32 %v1865_v50, %v620_v13  ;;  %850 = vrot.lane.b32.xlu0 %v769_v14, %s1491_s22  ;;  %v770_v18 = vsel %vm134_vm0, %v738_v7, 0.0 }
 0x1db   :  { %v585_v15 = vpop.permute.xlu0 %584  ;;  %v522_v19 = vpop.permute.xlu1 %521 }
 0x1dc   :  { %v1904_v20 = vmax.f32 %v640_v45, 0.0  ;;  %v562_v47 = vadd.f32 %v522_v19, %v1806_v32  ;;  %852 = vrot.lane.b32.xlu1 %v770_v18, %s1491_s22  ;;  %v641_v22 = vadd.f32 %v1865_v50, %v621_v16 }
 0x1de   :  { %790 = vrot.lane.b32.xlu0 %v1904_v20, %s1490_s19  ;;  %v1912_v25 = vmax.f32 %v641_v22, 0.0  ;;  %v739_v26 = vrot.slane %v1904_v20, 1  ;;  %v624_v28 = vadd.f32 %v1856_v46, %v562_v47 }
 0x1df   :  { %v520_v31 = vpop.permute.xlu0 %519  ;;  %v583_v42 = vpop.permute.xlu1 %582 }
 0x1e0   :  { %v561_v44 = vadd.f32 %v1792_v30, %v520_v31  ;;  %v622_v32 = vadd.f32 %v583_v42, %v560_v24  ;;  %792 = vrot.lane.b32.xlu1 %v1912_v25, %s1490_s19  ;;  %v771_v48 = vsel %vm134_vm0, %v739_v26, 0.0  ;;  %v740_v17 = vrot.slane %v1912_v25, 1 }
 0x1e1   :  { %v644_v54 = vadd.f32 %v1865_v50, %v624_v28 }
 0x1e2   :  { %v623_v27 = vadd.f32 %v585_v15, %v561_v44  ;;  %v642_v51 = vadd.f32 %v1865_v50, %v622_v32  ;;  %854 = vrot.lane.b32.xlu0 %v771_v48, %s1491_s22  ;;  %v772_v52 = vsel %vm134_vm0, %v740_v17, 0.0 }
 0x1e3   :  { %v526_v29 = vpop.permute.xlu0 %525  ;;  %v1935_v59 = vmax.f32 %v644_v54, 0.0 }
 0x1e4   :  { %v1924_v53 = vmax.f32 %v642_v51, 0.0  ;;  %856 = vrot.lane.b32.xlu1 %v772_v52, %s1491_s22  ;;  %v643_v30 = vadd.f32 %v1865_v50, %v623_v27  ;;  %v524_v56 = vpop.permute.xlu1 %523  ;;  %v564_v3 = vadd.f32 %v526_v29, %v1816_v34 }
 0x1e5   :  { %v743_v1 = vrot.slane %v1935_v59, 1 }
 0x1e6   :  { %794 = vrot.lane.b32.xlu0 %v1924_v53, %s1490_s19  ;;  %v1931_v55 = vmax.f32 %v643_v30, 0.0  ;;  %v741_v60 = vrot.slane %v1924_v53, 1 }
 0x1e7   :  { %v589_v57 = vpop.permute.xlu0 %588  ;;  %v775_v10 = vsel %vm134_vm0, %v743_v1, 0.0 }
 0x1e8   :  { %v625_v58 = vadd.f32 %v589_v57, %v524_v56  ;;  %796 = vrot.lane.b32.xlu1 %v1931_v55, %s1490_s19  ;;  %v773_v0 = vsel %vm134_vm0, %v741_v60, 0.0  ;;  %v742_v2 = vrot.slane %v1931_v55, 1 }
 0x1ea   :  { %v645_v61 = vadd.f32 %v1865_v50, %v625_v58  ;;  %798 = vrot.lane.b32.xlu0 %v1935_v59, %s1490_s19  ;;  %v774_v41 = vsel %vm134_vm0, %v742_v2, 0.0 }
 0x1eb   :  { %v593_v62 = vpop.permute.xlu0 %592  ;;  %v530_v63 = vpop.permute.xlu1 %529 }
 0x1ec   :  { %v1941_v35 = vmax.f32 %v645_v61, 0.0  ;;  %v566_v45 = vadd.f32 %v530_v63, %v1828_v37 }
 0x1ee   :  { %858 = vrot.lane.b32.xlu0 %v773_v0, %s1491_s22  ;;  %800 = vrot.lane.b32.xlu1 %v1941_v35, %s1490_s19  ;;  %v744_v11 = vrot.slane %v1941_v35, 1 }
 0x1ef   :  { %v528_v4 = vpop.permute.xlu0 %527  ;;  %v591_v6 = vpop.permute.xlu1 %590 }
 0x1f0   :  { %v565_v5 = vadd.f32 %v1812_v21, %v528_v4  ;;  %v626_v8 = vadd.f32 %v591_v6, %v564_v3  ;;  %v776_v16 = vsel %vm134_vm0, %v744_v11, 0.0 }
 0x1f2   :  { %v627_v12 = vadd.f32 %v593_v62, %v565_v5  ;;  %v646_v13 = vadd.f32 %v1865_v50, %v626_v8  ;;  %862 = vrot.lane.b32.xlu0 %v775_v10, %s1491_s22  ;;  %860 = vrot.lane.b32.xlu1 %v774_v41, %s1491_s22  ;;  %v688_v8 = vrot.slane %v1877_v33, 7 }
 0x1f3   :  { %v597_v34 = vpop.permute.xlu0 %596  ;;  %v534_v14 = vpop.permute.xlu1 %533 }
 0x1f4   :  { %v1957_v7 = vmax.f32 %v646_v13, 0.0  ;;  %v647_v21 = vadd.f32 %v1865_v50, %v627_v12  ;;  %v568_v42 = vadd.f32 %v534_v14, %v1840_v40  ;;  %v720_v41 = vsel %vm85_vm1, 0.0, %v688_v8 }
 0x1f6   :  { %802 = vrot.lane.b32.xlu0 %v1957_v7, %s1490_s19  ;;  %864 = vrot.lane.b32.xlu1 %v776_v16, %s1491_s22  ;;  %v745_v18 = vrot.slane %v1957_v7, 1  ;;  %v1966_v15 = vmax.f32 %v647_v21, 0.0  ;;  %v690_v21 = vrot.slane %v1893_v9, 7 }
 0x1f7   :  { %v532_v19 = vpop.permute.xlu0 %531  ;;  %v595_v47 = vpop.permute.xlu1 %594 }
 0x1f8   :  { %v567_v22 = vadd.f32 %v1822_v36, %v532_v19  ;;  %v628_v24 = vadd.f32 %v595_v47, %v566_v45  ;;  %v777_v26 = vsel %vm134_vm0, %v745_v18, 0.0  ;;  %v746_v28 = vrot.slane %v1966_v15, 1 }
 0x1f9   :  { %v722_v19 = vsel %vm85_vm1, 0.0, %v690_v21 }
 0x1fa   :  { %v629_v31 = vadd.f32 %v597_v34, %v567_v22  ;;  %v648_v37 = vadd.f32 %v1865_v50, %v628_v24  ;;  %866 = vrot.lane.b32.xlu0 %v777_v26, %s1491_s22  ;;  %804 = vrot.lane.b32.xlu1 %v1966_v15, %s1490_s19  ;;  %v778_v27 = vsel %vm134_vm0, %v746_v28, 0.0  ;;  %v689_v34 = vrot.slane %v1887_v39, 7 }
 0x1fb   :  { %v691_v26 = vrot.slane %v1904_v20, 7  ;;  %v692_v28 = vrot.slane %v1912_v25, 7  ;;  %v693_v25 = vrot.slane %v1924_v53, 7 }
 0x1fc   :  { %v1976_v44 = vmax.f32 %v648_v37, 0.0  ;;  %v536_v32 = vpop.permute.xlu0 %535  ;;  %v599_v48 = vpop.permute.xlu1 %598  ;;  %v649_v36 = vadd.f32 %v1865_v50, %v629_v31  ;;  %v721_v45 = vsel %vm85_vm1, 0.0, %v689_v34 }
 0x1fd   :  { %v630_v17 = vadd.f32 %v599_v48, %v568_v42  ;;  %v569_v40 = vadd.f32 %v1834_v38, %v536_v32  ;;  %v723_v37 = vsel %vm85_vm1, 0.0, %v691_v26  ;;  %v724_v48 = vsel %vm85_vm1, 0.0, %v692_v28 }
 0x1fe   :  { %806 = vrot.lane.b32.xlu0 %v1976_v44, %s1490_s19  ;;  %868 = vrot.lane.b32.xlu1 %v778_v27, %s1491_s22  ;;  %v747_v51 = vrot.slane %v1976_v44, 1  ;;  %v1984_v52 = vmax.f32 %v649_v36, 0.0  ;;  %v699_v21 = vrot.slane %v1976_v44, 7 }
 0x1ff   :  { %v650_v29 = vadd.f32 %v1865_v50, %v630_v17 }
 0x200   :  { %v601_v30 = vpop.permute.xlu0 %600  ;;  %v538_v54 = vpop.permute.xlu1 %537  ;;  %v779_v56 = vsel %vm134_vm0, %v747_v51, 0.0  ;;  %v748_v60 = vrot.slane %v1984_v52, 1 }
 0x201   :  { %v631_v57 = vadd.f32 %v601_v30, %v569_v40  ;;  %v570_v58 = vadd.f32 %v538_v54, %v1846_v43  ;;  %v1996_v62 = vmax.f32 %v650_v29, 0.0  ;;  %v725_v30 = vsel %vm85_vm1, 0.0, %v693_v25 }
 0x202   :  { %870 = vrot.lane.b32.xlu0 %v779_v56, %s1491_s22  ;;  %808 = vrot.lane.b32.xlu1 %v1984_v52, %s1490_s19  ;;  %v780_v0 = vsel %vm134_vm0, %v748_v60, 0.0  ;;  %v694_v54 = vrot.slane %v1931_v55, 7  ;;  %v695_v56 = vrot.slane %v1935_v59, 7 }
 0x203   :  { %v651_v61 = vadd.f32 %v1865_v50, %v631_v57  ;;  %v632_v38 = vadd.f32 %v1856_v46, %v570_v58  ;;  %v749_v3 = vrot.slane %v1996_v62, 1 }
 0x204   :  { %v727_v53 = vsel %vm85_vm1, 0.0, %v695_v56 }
 0x205   :  { %v1998_v63 = vmax.f32 %v651_v61, 0.0  ;;  %v652_v1 = vadd.f32 %v1865_v50, %v632_v38  ;;  %v781_v50 = vsel %vm134_vm0, %v749_v3, 0.0  ;;  %v726_v38 = vsel %vm85_vm1, 0.0, %v694_v54 }
 0x206   :  { %872 = vrot.lane.b32.xlu1 %v780_v0, %s1491_s22  ;;  %810 = vrot.lane.b32.xlu0 %v1996_v62, %s1490_s19  ;;  %v696_v0 = vrot.slane %v1941_v35, 7 }
 0x207   :  { %v2005_v43 = vmax.f32 %v652_v1, 0.0  ;;  %v750_v2 = vrot.slane %v1998_v63, 1 }
 0x209   :  { %v782_v4 = vsel %vm134_vm0, %v750_v2, 0.0  ;;  %v751_v6 = vrot.slane %v2005_v43, 1 }
 0x20a   :  { %812 = vrot.lane.b32.xlu1 %v1998_v63, %s1490_s19  ;;  %814 = vrot.lane.b32.xlu0 %v2005_v43, %s1490_s19 }
 0x20b   :  { %v783_v5 = vsel %vm134_vm0, %v751_v6, 0.0  ;;  %v697_v6 = vrot.slane %v1957_v7, 7 }
 0x20e   :  { %876 = vrot.lane.b32.xlu1 %v782_v4, %s1491_s22  ;;  %874 = vrot.lane.b32.xlu0 %v781_v50, %s1491_s22  ;;  %v728_v50 = vsel %vm85_vm1, 0.0, %v696_v0 }
 0x212   :  { %878 = vrot.lane.b32.xlu0 %v783_v5, %s1491_s22 }
 0x240   :  { %v785_v10 = vpop.permute.xlu1 %784 }
 0x241   :  { %v896_v11 = vsel %vm263_vm2, %v720_v41, %v785_v10  ;;  %v729_v41 = vsel %vm85_vm1, 0.0, %v697_v6 }
 0x244   :  { %v849_v12 = vpop.permute.xlu1 %848 }
 0x245   :  { %v912_v13 = vsel %vm280_vm3, %v896_v11, %v849_v12  ;;  %v698_v11 = vrot.slane %v1966_v15, 7  ;;  %v731_v15 = vsel %vm85_vm1, 0.0, %v699_v21 }
 0x246   :  { %1437 = vmatprep.mubr.msk.f32.mxu1 %vm297_vm4, %v912_v13 }
 0x247   :  { %v730_v7 = vsel %vm85_vm1, 0.0, %v698_v11 }
 0x248   :  { %v787_v14 = vpop.permute.xlu0 %786 }
 0x249   :  { %v897_v33 = vsel %vm263_vm2, %v721_v45, %v787_v14 }
 0x24a   :  { %v789_v16 = vpop.permute.xlu1 %788 }
 0x24b   :  { %v898_v22 = vsel %vm263_vm2, %v722_v19, %v789_v16  ;;  %v700_v19 = vrot.slane %v1984_v52, 7  ;;  %v701_v52 = vrot.slane %v1996_v62, 7 }
 0x24c   :  { %v851_v18 = vpop.permute.xlu0 %850 }
 0x24d   :  { %v913_v47 = vsel %vm280_vm3, %v897_v33, %v851_v18  ;;  %v732_v44 = vsel %vm85_vm1, 0.0, %v700_v19 }
 0x24e   :  { %1438 = vmatmul.mubr.msk.f32.vlgmr.msra.gmra.mrb[0].mxu1 %vm297_vm4, %v913_v47  ;;  %v853_v24 = vpop.permute.xlu1 %852 }
 0x24f   :  { %v914_v39 = vsel %vm280_vm3, %v898_v22, %v853_v24 }
 0x250   :  { %v791_v9 = vpop.permute.xlu0 %790  ;;  %1440 = vmatprep.mubr.msk.f32.mxu1 %vm297_vm4, %v914_v39 }
 0x251   :  { %v899_v42 = vsel %vm263_vm2, %v723_v37, %v791_v9  ;;  %v702_v37 = vrot.slane %v1998_v63, 7 }
 0x252   :  { %v793_v31 = vpop.permute.xlu1 %792 }
 0x253   :  { %v900_v17 = vsel %vm263_vm2, %v724_v48, %v793_v31  ;;  %v733_v48 = vsel %vm85_vm1, 0.0, %v701_v52 }
 0x254   :  { %v855_v32 = vpop.permute.xlu0 %854 }
 0x255   :  { %v915_v36 = vsel %vm280_vm3, %v899_v42, %v855_v32 }
 0x256   :  { %1441 = vmatmul.mubr.msk.f32.gmra.mrb[2].mxu1 %vm297_vm4, %v915_v36  ;;  %v857_v20 = vpop.permute.xlu1 %856  ;;  %v703_v36 = vrot.slane %v2005_v43, 7 }
 0x257   :  { %v916_v27 = vsel %vm280_vm3, %v900_v17, %v857_v20  ;;  %v734_v17 = vsel %vm85_vm1, 0.0, %v702_v37 }
 0x258   :  { %v795_v51 = vpop.permute.xlu0 %794  ;;  %1443 = vmatprep.mubr.msk.f32.mxu1 %vm297_vm4, %v916_v27  ;;  %v735_v63 = vsel %vm85_vm1, 0.0, %v703_v36 }
 0x259   :  { %v901_v57 = vsel %vm263_vm2, %v725_v30, %v795_v51 }
 0x25a   :  { %v797_v40 = vpop.permute.xlu1 %796 }
 0x25b   :  { %v902_v1 = vsel %vm263_vm2, %v726_v38, %v797_v40 }
 0x25c   :  { %v799_v29 = vpop.permute.xlu0 %798 }
 0x25d   :  { %v903_v55 = vsel %vm263_vm2, %v727_v53, %v799_v29 }
 0x260   :  { %v859_v58 = vpop.permute.xlu0 %858  ;;  %v801_v60 = vpop.permute.xlu1 %800 }
 0x261   :  { %v917_v61 = vsel %vm280_vm3, %v901_v57, %v859_v58  ;;  %v904_v35 = vsel %vm263_vm2, %v728_v50, %v801_v60 }
 0x262   :  { %1444 = vmatmul.mubr.msk.f32.gmra.mrb[4].mxu1 %vm297_vm4, %v917_v61 }
 0x264   :  { %v863_v2 = vpop.permute.xlu0 %862  ;;  %v861_v59 = vpop.permute.xlu1 %860 }
 0x265   :  { %v919_v3 = vsel %vm280_vm3, %v903_v55, %v863_v2  ;;  %v918_v4 = vsel %vm280_vm3, %v902_v1, %v861_v59 }
 0x266   :  { %1446 = vmatprep.mubr.msk.f32.mxu1 %vm297_vm4, %v918_v4 }
 0x267   :  { %1447 = vmatmul.mubr.msk.f32.gmra.mrb[6].mxu1 %vm297_vm4, %v919_v3 }
 0x268   :  { %v803_v5 = vpop.permute.xlu0 %802  ;;  %v865_v8 = vpop.permute.xlu1 %864 }
 0x269   :  { %v920_v10 = vsel %vm280_vm3, %v904_v35, %v865_v8  ;;  %v905_v12 = vsel %vm263_vm2, %v729_v41, %v803_v5  ;;  %v1261_v35 = vsub.s32 1, %v1854_v23 }
 0x26a   :  { %1449 = vmatprep.mubr.msk.f32.mxu1 %vm297_vm4, %v920_v10 }
 0x26b   :  { %v2179_v8 = vrot.slane %v1862_v49, %v1261_v35 }
 0x26c   :  { %v867_v13 = vpop.permute.xlu0 %866  ;;  %v805_v34 = vpop.permute.xlu1 %804 }
 0x26d   :  { %v921_v14 = vsel %vm280_vm3, %v905_v12, %v867_v13  ;;  %v906_v16 = vsel %vm263_vm2, %v730_v7, %v805_v34 }
 0x26e   :  { %1450 = vmatmul.mubr.msk.f32.gmra.mrb[8].mxu1 %vm297_vm4, %v921_v14  ;;  %v1474_v14 = vld [vmem:[%s2323_s0] sm:$0xff] }
 0x270   :  { %v807_v45 = vpop.permute.xlu0 %806  ;;  %v869_v33 = vpop.permute.xlu1 %868 }
 0x271   :  { %v922_v18 = vsel %vm280_vm3, %v906_v16, %v869_v33  ;;  %v907_v47 = vsel %vm263_vm2, %v731_v15, %v807_v45  ;;  %v1475_v15 = vld [vmem:[%s2323_s0 + $0x8] sm:$0xff] }
 0x272   :  { %1452 = vmatprep.mubr.msk.f32.mxu1 %vm297_vm4, %v922_v18 }
 0x274   :  { %v871_v22 = vpop.permute.xlu0 %870  ;;  %v809_v24 = vpop.permute.xlu1 %808 }
 0x275   :  { %v923_v39 = vsel %vm280_vm3, %v907_v47, %v871_v22  ;;  %v908_v26 = vsel %vm263_vm2, %v732_v44, %v809_v24 }
 0x276   :  { %1453 = vmatmul.mubr.msk.f32.gmra.mrb[10].mxu1 %vm297_vm4, %v923_v39  ;;  %v1476_v39 = vld [vmem:[%s2323_s0 + $0x10] sm:$0xff] }
 0x278   :  { %v811_v9 = vpop.permute.xlu0 %810  ;;  %v873_v28 = vpop.permute.xlu1 %872 }
 0x279   :  { %v924_v31 = vsel %vm280_vm3, %v908_v26, %v873_v28  ;;  %v909_v20 = vsel %vm263_vm2, %v733_v48, %v811_v9 }
 0x27a   :  { %1455 = vmatprep.mubr.msk.f32.mxu1 %vm297_vm4, %v924_v31 }
 0x27c   :  { %v815_v42 = vpop.permute.xlu0 %814  ;;  %v813_v32 = vpop.permute.xlu1 %812 }
 0x27d   :  { %v910_v27 = vsel %vm263_vm2, %v734_v17, %v813_v32  ;;  %v911_v43 = vsel %vm263_vm2, %v735_v63, %v815_v42 }
 0x280   :  { %v875_v51 = vpop.permute.xlu0 %874  ;;  %v877_v25 = vpop.permute.xlu1 %876 }
 0x281   :  { %v925_v40 = vsel %vm280_vm3, %v909_v20, %v875_v51  ;;  %v926_v62 = vsel %vm280_vm3, %v910_v27, %v877_v25  ;;  %v1477_v20 = vld [vmem:[%s2323_s0 + $0x20] sm:$0xff] }
 0x282   :  { %1456 = vmatmul.mubr.msk.f32.gmra.mrb[12].mxu1 %vm297_vm4, %v925_v40  ;;  %v1478_v40 = vld [vmem:[%s2323_s0 + $0x18] sm:$0xff] }
 0x283   :  { %1458 = vmatprep.mubr.msk.f32.mxu1 %vm297_vm4, %v926_v62 }
 0x284   :  { %v879_v29 = vpop.permute.xlu0 %878 }
 0x285   :  { %v927_v30 = vsel %vm280_vm3, %v911_v43, %v879_v29 }
 0x286   :  { %1459 = vmatmul.mubr.msk.f32.gmra.mrb[14].mxu1 %vm297_vm4, %v927_v30 }
 0x321   :  { %v1439_v54 = vpop.f32.mrb[0].mxu1 }
 0x322   :  { %1139 = vrot.lane.b32.xlu1 %v1439_v54, %s1494_s5  ;;  %v1042_v56 = vpop.f32.mrb[1].mxu1 }
 0x326   :  { %1201 = vrot.lane.b32.xlu1 %v1439_v54, %s1493_s30 }
 0x329   :  { %v2102_v57 = vpop.f32.mrb[2].mxu1 }
 0x32a   :  { %1137 = vrot.lane.b32.xlu1 %v1042_v56, %s1494_s5  ;;  %v2105_v58 = vpop.f32.mrb[3].mxu1 }
 0x32b   :  { %1141 = vrot.lane.b32.xlu0 %v2105_v58, %s1494_s5 }
 0x32e   :  { %1143 = vrot.lane.b32.xlu1 %v2102_v57, %s1494_s5 }
 0x32f   :  { %1203 = vrot.lane.b32.xlu0 %v2105_v58, %s1493_s30 }
 0x332   :  { %1205 = vrot.lane.b32.xlu1 %v2102_v57, %s1493_s30 }
 0x335   :  { %v2115_v60 = vpop.f32.mrb[4].mxu1 }
 0x336   :  { %1147 = vrot.lane.b32.xlu1 %v2115_v60, %s1494_s5  ;;  %v2119_v61 = vpop.f32.mrb[5].mxu1 }
 0x337   :  { %1145 = vrot.lane.b32.xlu0 %v2119_v61, %s1494_s5 }
 0x33a   :  { %1209 = vrot.lane.b32.xlu1 %v2115_v60, %s1493_s30  ;;  %v1448_v38 = vpop.f32.mrb[6].mxu1 }
 0x33b   :  { %1207 = vrot.lane.b32.xlu0 %v2119_v61, %s1493_s30  ;;  %v2127_v53 = vpop.f32.mrb[7].mxu1 }
 0x33e   :  { %1151 = vrot.lane.b32.xlu1 %v1448_v38, %s1494_s5 }
 0x33f   :  { %1149 = vrot.lane.b32.xlu0 %v2127_v53, %s1494_s5 }
 0x341   :  { %v2132_v0 = vpop.f32.mrb[8].mxu1 }
 0x342   :  { %1213 = vrot.lane.b32.xlu1 %v1448_v38, %s1493_s30  ;;  %v2135_v1 = vpop.f32.mrb[9].mxu1 }
 0x343   :  { %1211 = vrot.lane.b32.xlu0 %v2127_v53, %s1493_s30 }
 0x347   :  { %1155 = vrot.lane.b32.xlu0 %v2132_v0, %s1494_s5 }
 0x349   :  { %v2141_v55 = vpop.f32.mrb[10].mxu1 }
 0x34a   :  { %v2143_v2 = vpop.f32.mrb[11].mxu1 }
 0x34b   :  { %1215 = vrot.lane.b32.xlu0 %v2132_v0, %s1493_s30  ;;  %1157 = vrot.lane.b32.xlu1 %v2143_v2, %s1494_s5 }
 0x34f   :  { %1153 = vrot.lane.b32.xlu0 %v2135_v1, %s1494_s5  ;;  %1217 = vrot.lane.b32.xlu1 %v2143_v2, %s1493_s30 }
 0x353   :  { %1159 = vrot.lane.b32.xlu0 %v2141_v55, %s1494_s5 }
 0x355   :  { %v2155_v59 = vpop.f32.mrb[12].mxu1 }
 0x356   :  { %v2157_v3 = vpop.f32.mrb[13].mxu1 }
 0x357   :  { %1219 = vrot.lane.b32.xlu0 %v2141_v55, %s1493_s30  ;;  %1161 = vrot.lane.b32.xlu1 %v2157_v3, %s1494_s5 }
 0x359   :  { %v1460_v4 = vpop.f32.mrb[14].mxu1 }
 0x35a   :  { %v2163_v50 = vpop.f32.mrb[15].mxu1 }
 0x35b   :  { %1163 = vrot.lane.b32.xlu0 %v2155_v59, %s1494_s5  ;;  %1221 = vrot.lane.b32.xlu1 %v2157_v3, %s1493_s30 }
 0x35f   :  { %1223 = vrot.lane.b32.xlu0 %v2155_v59, %s1493_s30  ;;  %1165 = vrot.lane.b32.xlu1 %v2163_v50, %s1494_s5 }
 0x363   :  { %1167 = vrot.lane.b32.xlu0 %v1460_v4, %s1494_s5  ;;  %1225 = vrot.lane.b32.xlu1 %v2163_v50, %s1493_s30 }
 0x367   :  { %1227 = vrot.lane.b32.xlu0 %v1460_v4, %s1493_s30 }
 0x394   :  { %v1140_v6 = vpop.permute.xlu1 %1139 }
 0x395   :  { %v1186_v13 = vadd.f32 %v1140_v6, %v1042_v56 }
 0x398   :  { %v1202_v5 = vpop.permute.xlu1 %1201 }
 0x39c   :  { %v1138_v10 = vpop.permute.xlu1 %1137 }
 0x39d   :  { %v1243_v41 = vadd.f32 %v1202_v5, %v1138_v10  ;;  %v1142_v11 = vpop.permute.xlu0 %1141  ;;  %v1480_v5 = vld [vmem:[%s2323_s0 + $0x30] sm:$0xff] }
 0x39e   :  { %v1187_v23 = vadd.f32 %v1439_v54, %v1142_v11  ;;  %v1481_v11 = vld [vmem:[%s2323_s0 + $0x28] sm:$0xff] }
 0x39f   :  { %v1263_v12 = vadd.f32 %v2179_v8, %v1243_v41 }
 0x3a0   :  { %v1144_v34 = vpop.permute.xlu1 %1143 }
 0x3a1   :  { %v1279_v7 = vadd.f32 %v1474_v14, %v1263_v12  ;;  %v1204_v21 = vpop.permute.xlu0 %1203  ;;  %v1188_v31 = vadd.f32 %v1144_v34, %v2105_v58 }
 0x3a2   :  { %v1244_v16 = vadd.f32 %v1204_v21, %v1186_v13 }
 0x3a3   :  { %v1295_v45 = vmax.f32 %v1279_v7, 0.0 }
 0x3a4   :  { %v1264_v33 = vadd.f32 %v2179_v8, %v1244_v16  ;;  %v1206_v49 = vpop.permute.xlu1 %1205 }
 0x3a5   :  { %1311 = vst.msk [vmem:[%s2327_s4] sm:$0xff] %vm263_vm2, %v1295_v45  ;;  %v1245_v18 = vadd.f32 %v1206_v49, %v1187_v23 }
 0x3a6   :  { %v1280_v19 = vadd.f32 %v1475_v15, %v1264_v33 }
 0x3a7   :  { %v1265_v47 = vadd.f32 %v2179_v8, %v1245_v18 }
 0x3a8   :  { %v1296_v22 = vmax.f32 %v1280_v19, 0.0  ;;  %v1148_v24 = vpop.permute.xlu1 %1147  ;;  %v1482_v19 = vld [vmem:[%s2323_s0 + $0x40] sm:$0xff] }
 0x3a9   :  { %v1281_v44 = vadd.f32 %v1476_v39, %v1265_v47  ;;  %v1146_v26 = vpop.permute.xlu0 %1145  ;;  %v1190_v30 = vadd.f32 %v1148_v24, %v2119_v61  ;;  %v1479_v61 = vld [vmem:[%s2323_s0 + $0x38] sm:$0xff] }
 0x3aa   :  { %1312 = vst.msk [vmem:[%s2327_s4 + $0x8] sm:$0xff] %vm263_vm2, %v1296_v22  ;;  %v1189_v9 = vadd.f32 %v2102_v57, %v1146_v26  ;;  %v1483_v22 = vld [vmem:[%s2323_s0 + $0x48] sm:$0xff] }
 0x3ab   :  { %v1297_v28 = vmax.f32 %v1281_v44, 0.0 }
 0x3ac   :  { %v1210_v52 = vpop.permute.xlu1 %1209 }
 0x3ad   :  { %1313 = vst.msk [vmem:[%s2327_s4 + $0x10] sm:$0xff] %vm263_vm2, %v1297_v28  ;;  %v1247_v37 = vadd.f32 %v1210_v52, %v1189_v9  ;;  %v1208_v42 = vpop.permute.xlu0 %1207 }
 0x3ae   :  { %v1246_v32 = vadd.f32 %v1208_v42, %v1188_v31  ;;  %v1484_v42 = vld [vmem:[%s2323_s0 + $0x50] sm:$0xff] }
 0x3af   :  { %v1267_v48 = vadd.f32 %v2179_v8, %v1247_v37 }
 0x3b0   :  { %v1266_v36 = vadd.f32 %v2179_v8, %v1246_v32  ;;  %v1152_v17 = vpop.permute.xlu1 %1151 }
 0x3b1   :  { %v1283_v27 = vadd.f32 %v1477_v20, %v1267_v48  ;;  %v1192_v51 = vadd.f32 %v1152_v17, %v2127_v53  ;;  %v1150_v25 = vpop.permute.xlu0 %1149 }
 0x3b2   :  { %v1282_v62 = vadd.f32 %v1478_v40, %v1266_v36  ;;  %v1191_v63 = vadd.f32 %v2115_v60, %v1150_v25 }
 0x3b3   :  { %v1299_v43 = vmax.f32 %v1283_v27, 0.0  ;;  %v1250_v29 = vadd.f32 %v1192_v51, %v1856_v46 }
 0x3b4   :  { %v1298_v54 = vmax.f32 %v1282_v62, 0.0  ;;  %v1214_v56 = vpop.permute.xlu1 %1213 }
 0x3b5   :  { %1315 = vst.msk [vmem:[%s2327_s4 + $0x20] sm:$0xff] %vm263_vm2, %v1299_v43  ;;  %v1270_v57 = vadd.f32 %v2179_v8, %v1250_v29  ;;  %v1249_v58 = vadd.f32 %v1214_v56, %v1191_v63  ;;  %v1212_v38 = vpop.permute.xlu0 %1211 }
 0x3b6   :  { %1314 = vst.msk [vmem:[%s2327_s4 + $0x18] sm:$0xff] %vm263_vm2, %v1298_v54  ;;  %v1248_v60 = vadd.f32 %v1212_v38, %v1190_v30  ;;  %v1486_v30 = vld [vmem:[%s2323_s0 + $0x60] sm:$0xff] }
 0x3b7   :  { %v1286_v53 = vadd.f32 %v1479_v61, %v1270_v57  ;;  %v1269_v4 = vadd.f32 %v2179_v8, %v1249_v58 }
 0x3b8   :  { %v1268_v6 = vadd.f32 %v2179_v8, %v1248_v60 }
 0x3b9   :  { %v1302_v35 = vmax.f32 %v1286_v53, 0.0  ;;  %v1285_v10 = vadd.f32 %v1480_v5, %v1269_v4  ;;  %v1156_v41 = vpop.permute.xlu0 %1155 }
 0x3ba   :  { %v1284_v12 = vadd.f32 %v1481_v11, %v1268_v6  ;;  %v1194_v21 = vadd.f32 %v1156_v41, %v2135_v1  ;;  %v1489_v41 = vld [vmem:[%s2323_s0 + $0x70] sm:$0xff] }
 0x3bb   :  { %1318 = vst.msk [vmem:[%s2327_s4 + $0x38] sm:$0xff] %vm263_vm2, %v1302_v35  ;;  %v1301_v13 = vmax.f32 %v1285_v10, 0.0 }
 0x3bc   :  { %v1300_v34 = vmax.f32 %v1284_v12, 0.0 }
 0x3bd   :  { %1317 = vst.msk [vmem:[%s2327_s4 + $0x30] sm:$0xff] %vm263_vm2, %v1301_v13  ;;  %v1216_v14 = vpop.permute.xlu0 %1215  ;;  %v1158_v7 = vpop.permute.xlu1 %1157 }
 0x3be   :  { %1316 = vst.msk [vmem:[%s2327_s4 + $0x28] sm:$0xff] %vm263_vm2, %v1300_v34  ;;  %v1195_v1 = vadd.f32 %v2132_v0, %v1158_v7 }
 0x3c1   :  { %v1154_v16 = vpop.permute.xlu0 %1153  ;;  %v1218_v45 = vpop.permute.xlu1 %1217 }
 0x3c2   :  { %v1251_v23 = vadd.f32 %v1216_v14, %v1154_v16  ;;  %v1252_v33 = vadd.f32 %v1218_v45, %v1194_v21 }
 0x3c4   :  { %v1271_v49 = vadd.f32 %v2179_v8, %v1251_v23  ;;  %v1272_v18 = vadd.f32 %v2179_v8, %v1252_v33 }
 0x3c5   :  { %v1160_v15 = vpop.permute.xlu0 %1159 }
 0x3c6   :  { %v1287_v47 = vadd.f32 %v1482_v19, %v1271_v49  ;;  %v1288_v24 = vadd.f32 %v1483_v22, %v1272_v18  ;;  %v1196_v31 = vadd.f32 %v1160_v15, %v2143_v2  ;;  %v1485_v2 = vld [vmem:[%s2323_s0 + $0x58] sm:$0xff] }
 0x3c8   :  { %v1303_v39 = vmax.f32 %v1287_v47, 0.0  ;;  %v1304_v44 = vmax.f32 %v1288_v24, 0.0 }
 0x3c9   :  { %v1220_v26 = vpop.permute.xlu0 %1219  ;;  %v1162_v9 = vpop.permute.xlu1 %1161 }
 0x3ca   :  { %1319 = vst.msk [vmem:[%s2327_s4 + $0x40] sm:$0xff] %vm263_vm2, %v1303_v39  ;;  %1320 = vst.msk [vmem:[%s2327_s4 + $0x48] sm:$0xff] %vm263_vm2, %v1304_v44  ;;  %v1253_v28 = vadd.f32 %v1220_v26, %v1195_v1  ;;  %v1197_v17 = vadd.f32 %v2141_v55, %v1162_v9 }
 0x3cc   :  { %v1273_v52 = vadd.f32 %v2179_v8, %v1253_v28 }
 0x3cd   :  { %v1164_v0 = vpop.permute.xlu0 %1163  ;;  %v1222_v37 = vpop.permute.xlu1 %1221 }
 0x3ce   :  { %v1289_v32 = vadd.f32 %v1484_v42, %v1273_v52  ;;  %v1254_v48 = vadd.f32 %v1222_v37, %v1196_v31  ;;  %v1198_v62 = vadd.f32 %v1164_v0, %v2157_v3 }
 0x3d0   :  { %v1305_v36 = vmax.f32 %v1289_v32, 0.0  ;;  %v1274_v20 = vadd.f32 %v2179_v8, %v1254_v48 }
 0x3d1   :  { %v1224_v27 = vpop.permute.xlu0 %1223  ;;  %v1166_v51 = vpop.permute.xlu1 %1165 }
 0x3d2   :  { %1321 = vst.msk [vmem:[%s2327_s4 + $0x50] sm:$0xff] %vm263_vm2, %v1305_v36  ;;  %v1290_v25 = vadd.f32 %v1485_v2, %v1274_v20  ;;  %v1255_v40 = vadd.f32 %v1224_v27, %v1197_v17  ;;  %v1199_v3 = vadd.f32 %v2155_v59, %v1166_v51 }
 0x3d4   :  { %v1306_v63 = vmax.f32 %v1290_v25, 0.0  ;;  %v1275_v55 = vadd.f32 %v2179_v8, %v1255_v40 }
 0x3d5   :  { %v1168_v43 = vpop.permute.xlu0 %1167  ;;  %v1226_v29 = vpop.permute.xlu1 %1225 }
 0x3d6   :  { %1322 = vst.msk [vmem:[%s2327_s4 + $0x58] sm:$0xff] %vm263_vm2, %v1306_v63  ;;  %v1291_v54 = vadd.f32 %v1486_v30, %v1275_v55  ;;  %v1200_v56 = vadd.f32 %v1168_v43, %v2163_v50  ;;  %v1256_v57 = vadd.f32 %v1226_v29, %v1198_v62  ;;  %v1487_v50 = vld [vmem:[%s2323_s0 + $0x68] sm:$0xff] }
 0x3d8   :  { %v1307_v58 = vmax.f32 %v1291_v54, 0.0  ;;  %v1258_v38 = vadd.f32 %v1200_v56, %v1856_v46  ;;  %v1276_v60 = vadd.f32 %v2179_v8, %v1256_v57  ;;  %v1488_v46 = vld [vmem:[%s2323_s0 + $0x78] sm:$0xff] }
 0x3d9   :  { %v1228_v61 = vpop.permute.xlu0 %1227 }
 0x3da   :  { %1323 = vst.msk [vmem:[%s2327_s4 + $0x60] sm:$0xff] %vm263_vm2, %v1307_v58  ;;  %v1278_v53 = vadd.f32 %v2179_v8, %v1258_v38  ;;  %v1292_v4 = vadd.f32 %v1487_v50, %v1276_v60  ;;  %v1257_v6 = vadd.f32 %v1228_v61, %v1199_v3 }
 0x3dc   :  { %v1294_v59 = vadd.f32 %v1488_v46, %v1278_v53  ;;  %v1308_v35 = vmax.f32 %v1292_v4, 0.0  ;;  %v1277_v5 = vadd.f32 %v2179_v8, %v1257_v6 }
 0x3de   :  { %v1310_v10 = vmax.f32 %v1294_v59, 0.0  ;;  %1324 = vst.msk [vmem:[%s2327_s4 + $0x68] sm:$0xff] %vm263_vm2, %v1308_v35  ;;  %v1293_v11 = vadd.f32 %v1489_v41, %v1277_v5 }
 0x3e0   :  { %1326 = vst.msk [vmem:[%s2327_s4 + $0x78] sm:$0xff] %vm263_vm2, %v1310_v10  ;;  %v1309_v12 = vmax.f32 %v1293_v11, 0.0 }
 0x3e2   :  { %1325 = vst.msk [vmem:[%s2327_s4 + $0x70] sm:$0xff] %vm263_vm2, %v1309_v12 }

// kernel: _lambda_.2
= control target key start
LH: loop header
LB: loop body
LE: loop exit
PB: predicated region body
PF: predicated region fallthrough
CT: control target
= control target key end

     0   :  { %s1345_s19 = smov 16   ;;  %vm86_vm0 = vcmask 1040384   ;;  %vm151_vm1 = vcmask 130048   ;;  %vm168_vm2 = vcmask 261120   ;;  %vm577_vm3 = vcmask 1046528   ;;  %s2073_s0 = inlined_call_operand.vmem [shape: f32[2,8,8,16], index: 0, kind: input, shape index: {}]   ;;  %s2074_s1 = inlined_call_operand.vmem [shape: f32[32,24], index: 1, kind: input, shape index: {}]   ;;  %s2075_s2 = inlined_call_operand.vmem [shape: f32[24,24], index: 2, kind: input, shape index: {}]   ;;  %s2076_s3 = inlined_call_operand.vmem [shape: f32[2,8], index: 3, kind: input, shape index: {}]   ;;  %s2077_s4 = inlined_call_operand.vmem [shape: f32[2,8,8,8], index: 4, kind: output, shape index: {}]  }
   0x1   :  { %v17_v0 = vld [vmem:[%s2073_s0] sm:$0xff]  ;;  %v19_v1 = vld [vmem:[%s2073_s0 + $0x10] sm:$0xff]  ;;  %v18_v2 = vld [vmem:[%s2073_s0 + $0x8] sm:$0xff]  ;;  %vm706_vm4 = vcmask 64512   ;;  %vm739_vm5 = vcmask 195584  }
   0x2   :  { %103 = vrot.lane.b32.xlu0 %v17_v0, %s1345_s19  ;;  %107 = vrot.lane.b32.xlu1 %v19_v1, %s1345_s19  ;;  %v20_v3 = vld [vmem:[%s2073_s0 + $0x18] sm:$0xff]  ;;  %v21_v4 = vld [vmem:[%s2073_s0 + $0x20] sm:$0xff]  ;;  %v54_v22 = vrot.slane %v17_v0, 7  ;;  %v56_v23 = vrot.slane %v19_v1, 7  ;;  %v55_v24 = vrot.slane %v18_v2, 7 }
   0x3   :  { %v22_v5 = vld [vmem:[%s2073_s0 + $0x28] sm:$0xff]  ;;  %v34_v6 = vld [vmem:[%s2074_s1] sm:$0xff]  ;;  %v36_v9 = vld [vmem:[%s2074_s1 + $0x10] sm:$0xff]  ;;  %v57_v26 = vrot.slane %v20_v3, 7  ;;  %v58_v31 = vrot.slane %v21_v4, 7 }
   0x4   :  { %v35_v7 = vld [vmem:[%s2074_s1 + $0x8] sm:$0xff]  ;;  %v37_v10 = vld [vmem:[%s2074_s1 + $0x18] sm:$0xff]  ;;  %v23_v12 = vld [vmem:[%s2073_s0 + $0x30] sm:$0xff]  ;;  %v87_v25 = vsel %vm86_vm0, 0.0, %v54_v22  ;;  %v89_v29 = vsel %vm86_vm0, 0.0, %v56_v23  ;;  %v88_v32 = vsel %vm86_vm0, 0.0, %v55_v24 }
   0x5   :  { %v1328_v8 = vpack.c.bf16 %v35_v7, %v34_v6  ;;  %v1332_v11 = vpack.c.bf16 %v37_v10, %v36_v9  ;;  %v24_v13 = vld [vmem:[%s2073_s0 + $0x38] sm:$0xff]  ;;  %v25_v14 = vld [vmem:[%s2073_s0 + $0x40] sm:$0xff]  ;;  %v1425_v15 = vld [vmem:[%s2073_s0 + $0x48] sm:$0xff]  ;;  %v59_v33 = vrot.slane %v22_v5, 7  ;;  %v90_v36 = vsel %vm86_vm0, 0.0, %v57_v26 }
   0x6   :  { %105 = vrot.lane.b32.xlu0 %v18_v2, %s1345_s19  ;;  %109 = vrot.lane.b32.xlu1 %v20_v3, %s1345_s19  ;;  %v1433_v16 = vld [vmem:[%s2073_s0 + $0x50] sm:$0xff]  ;;  %v1438_v17 = vld [vmem:[%s2073_s0 + $0x58] sm:$0xff]  ;;  %v60_v39 = vrot.slane %v23_v12, 7  ;;  %v91_v40 = vsel %vm86_vm0, 0.0, %v58_v31  ;;  %v61_v42 = vrot.slane %v24_v13, 7  ;;  %v62_v47 = vrot.slane %v25_v14, 7 }
   0x7   :  { %1329 = vmatprep.subr.bf16.mxu0 %v1328_v8  ;;  %v1447_v18 = vld [vmem:[%s2073_s0 + $0x60] sm:$0xff]  ;;  %v1452_v19 = vld [vmem:[%s2073_s0 + $0x68] sm:$0xff]  ;;  %v1461_v20 = vld [vmem:[%s2073_s0 + $0x70] sm:$0xff]  ;;  %v92_v44 = vsel %vm86_vm0, 0.0, %v59_v33  ;;  %v63_v50 = vrot.slane %v1425_v15, 7  ;;  %v64_v55 = vrot.slane %v1433_v16, 7 }
   0x8   :  { %1331 = vmatpush3.bf16.msra.mxu0 %v1328_v8  ;;  %v1466_v21 = vld [vmem:[%s2073_s0 + $0x78] sm:$0xff]  ;;  %v93_v48 = vsel %vm86_vm0, 0.0, %v60_v39  ;;  %v94_v52 = vsel %vm86_vm0, 0.0, %v61_v42  ;;  %v95_v56 = vsel %vm86_vm0, 0.0, %v62_v47  ;;  %v65_v58 = vrot.slane %v1438_v17, 7  ;;  %s1346_s0 = smov 120  }
   0x9   :  { %1333 = vmatprep.subr.bf16.mxu0 %v1332_v11  ;;  %v96_v60 = vsel %vm86_vm0, 0.0, %v63_v50  ;;  %v66_v63 = vrot.slane %v1447_v18, 7  ;;  %v97_v0 = vsel %vm86_vm0, 0.0, %v64_v55  ;;  %v67_v2 = vrot.slane %v1452_v19, 7 }
   0xa   :  { %111 = vrot.lane.b32.xlu0 %v21_v4, %s1345_s19  ;;  %113 = vrot.lane.b32.xlu1 %v22_v5, %s1345_s19  ;;  %v98_v4 = vsel %vm86_vm0, 0.0, %v65_v58  ;;  %v68_v7 = vrot.slane %v1461_v20, 7  ;;  %v69_v10 = vrot.slane %v1466_v21, 7 }
   0xb   :  { %v99_v8 = vsel %vm86_vm0, 0.0, %v66_v63 }
   0xc   :  { %1335 = vmatpush3.bf16.msra.mxu0 %v1332_v11 }
   0xe   :  { %115 = vrot.lane.b32.xlu0 %v23_v12, %s1345_s19  ;;  %117 = vrot.lane.b32.xlu1 %v24_v13, %s1345_s19  ;;  %v100_v12 = vsel %vm86_vm0, 0.0, %v67_v2 }
  0x12   :  { %119 = vrot.lane.b32.xlu0 %v25_v14, %s1345_s19  ;;  %121 = vrot.lane.b32.xlu1 %v1425_v15, %s1345_s19  ;;  %v101_v15 = vsel %vm86_vm0, 0.0, %v68_v7 }
  0x16   :  { %123 = vrot.lane.b32.xlu0 %v1433_v16, %s1345_s19  ;;  %125 = vrot.lane.b32.xlu1 %v1438_v17, %s1345_s19 }
  0x1a   :  { %127 = vrot.lane.b32.xlu0 %v1447_v18, %s1345_s19  ;;  %129 = vrot.lane.b32.xlu1 %v1452_v19, %s1345_s19  ;;  %v102_v18 = vsel %vm86_vm0, 0.0, %v69_v10 }
  0x1e   :  { %131 = vrot.lane.b32.xlu0 %v1461_v20, %s1345_s19  ;;  %133 = vrot.lane.b32.xlu1 %v1466_v21, %s1345_s19 }
  0x74   :  { %v104_v27 = vpop.permute.xlu0 %103  ;;  %v108_v28 = vpop.permute.xlu1 %107 }
  0x75   :  { %v152_v30 = vsel %vm151_vm1, %v87_v25, %v104_v27  ;;  %v154_v34 = vsel %vm151_vm1, %v89_v29, %v108_v28 }
  0x76   :  { %1274 = vmatprep.mubr.msk.f32.mxu0 %vm168_vm2, %v152_v30 }
  0x78   :  { %v106_v35 = vpop.permute.xlu0 %105  ;;  %v110_v37 = vpop.permute.xlu1 %109 }
  0x79   :  { %v153_v38 = vsel %vm151_vm1, %v88_v32, %v106_v35  ;;  %v155_v41 = vsel %vm151_vm1, %v90_v36, %v110_v37 }
  0x7a   :  { %1275 = vmatmul.mubr.msk.f32.vlgmr.msra.gmra.mrb[0].mxu0 %vm168_vm2, %v153_v38  ;;  %v442_v38 = vlaneseq }
  0x7b   :  { %1277 = vmatprep.mubr.msk.f32.mxu0 %vm168_vm2, %v154_v34 }
  0x7c   :  { %v112_v43 = vpop.permute.xlu0 %111  ;;  %v114_v45 = vpop.permute.xlu1 %113  ;;  %v1591_v39 = vshrl.u32 %v442_v38, 7 }
  0x7d   :  { %v156_v46 = vsel %vm151_vm1, %v91_v40, %v112_v43  ;;  %v157_v49 = vsel %vm151_vm1, %v92_v44, %v114_v45  ;;  %v478_v40 = vld [vmem:[%s2075_s2] sm:$0xff]  ;;  %v480_v45 = vld [vmem:[%s2075_s2 + $0x10] sm:$0xff] }
  0x7e   :  { %1278 = vmatmul.mubr.msk.f32.gmra.mrb[2].mxu0 %vm168_vm2, %v155_v41  ;;  %v479_v41 = vld [vmem:[%s2075_s2 + $0x8] sm:$0xff]  ;;  %v444_v43 = vsub.s32 0, %v1591_v39  ;;  %v1603_v44 = vld [vmem:[%s2076_s3] sm:$0x3]  ;;  %s1347_s2 = smov 8   ;;  %s1348_s3 = smov 112  }
  0x7f   :  { %1280 = vmatprep.mubr.msk.f32.mxu0 %vm168_vm2, %v156_v46  ;;  %v1336_v42 = vpack.c.bf16 %v479_v41, %v478_v40 }
  0x80   :  { %v116_v51 = vpop.permute.xlu0 %115  ;;  %v118_v53 = vpop.permute.xlu1 %117  ;;  %v1609_v46 = vrot.slane %v1603_v44, %v444_v43 }
  0x81   :  { %v158_v54 = vsel %vm151_vm1, %v93_v48, %v116_v51  ;;  %v159_v57 = vsel %vm151_vm1, %v94_v52, %v118_v53  ;;  %1337 = vmatprep.subr.bf16.mxu1 %v1336_v42 }
  0x82   :  { %1281 = vmatmul.mubr.msk.f32.gmra.mrb[4].mxu0 %vm168_vm2, %v157_v49  ;;  %1339 = vmatpush3.bf16.msra.mxu1 %v1336_v42 }
  0x83   :  { %1283 = vmatprep.mubr.msk.f32.mxu0 %vm168_vm2, %v158_v54  ;;  %1302 = vmatprep.subr.mxu1 %v480_v45 }
  0x84   :  { %v120_v59 = vpop.permute.xlu0 %119  ;;  %v122_v61 = vpop.permute.xlu1 %121 }
  0x85   :  { %v160_v62 = vsel %vm151_vm1, %v95_v56, %v120_v59  ;;  %v161_v1 = vsel %vm151_vm1, %v96_v60, %v122_v61 }
  0x86   :  { %1284 = vmatmul.mubr.msk.f32.gmra.mrb[6].mxu0 %vm168_vm2, %v159_v57  ;;  %1303 = vmatpush3.msra.mxu1 %v480_v45 }
  0x87   :  { %1286 = vmatprep.mubr.msk.f32.mxu0 %vm168_vm2, %v160_v62 }
  0x88   :  { %v124_v3 = vpop.permute.xlu0 %123  ;;  %v126_v5 = vpop.permute.xlu1 %125 }
  0x89   :  { %v162_v6 = vsel %vm151_vm1, %v97_v0, %v124_v3  ;;  %v163_v9 = vsel %vm151_vm1, %v98_v4, %v126_v5 }
  0x8a   :  { %1287 = vmatmul.mubr.msk.f32.gmra.mrb[8].mxu0 %vm168_vm2, %v161_v1 }
  0x8b   :  { %1289 = vmatprep.mubr.msk.f32.mxu0 %vm168_vm2, %v162_v6 }
  0x8c   :  { %v128_v11 = vpop.permute.xlu0 %127  ;;  %v130_v13 = vpop.permute.xlu1 %129 }
  0x8d   :  { %v164_v14 = vsel %vm151_vm1, %v99_v8, %v128_v11  ;;  %v165_v16 = vsel %vm151_vm1, %v100_v12, %v130_v13 }
  0x8e   :  { %1290 = vmatmul.mubr.msk.f32.gmra.mrb[10].mxu0 %vm168_vm2, %v163_v9 }
  0x8f   :  { %1292 = vmatprep.mubr.msk.f32.mxu0 %vm168_vm2, %v164_v14 }
  0x90   :  { %v132_v17 = vpop.permute.xlu0 %131  ;;  %v134_v19 = vpop.permute.xlu1 %133 }
  0x91   :  { %v166_v20 = vsel %vm151_vm1, %v101_v15, %v132_v17  ;;  %v167_v21 = vsel %vm151_vm1, %v102_v18, %v134_v19 }
  0x92   :  { %1293 = vmatmul.mubr.msk.f32.gmra.mrb[12].mxu0 %vm168_vm2, %v165_v16 }
  0x93   :  { %1295 = vmatprep.mubr.msk.f32.mxu0 %vm168_vm2, %v166_v20 }
  0x96   :  { %1296 = vmatmul.mubr.msk.f32.gmra.mrb[14].mxu0 %vm168_vm2, %v167_v21 }
 0x14d   :  { %v1527_v22 = vpop.f32.mrb[0].mxu0 }
 0x14e   :  { %380 = vrot.lane.b32.xlu0 %v1527_v22, %s1346_s0  ;;  %v1531_v23 = vpop.f32.mrb[1].mxu0 }
 0x14f   :  { %378 = vrot.lane.b32.xlu1 %v1531_v23, %s1346_s0 }
 0x151   :  { %v1535_v24 = vpop.f32.mrb[2].mxu0 }
 0x152   :  { %v1537_v25 = vpop.f32.mrb[3].mxu0 }
 0x153   :  { %384 = vrot.lane.b32.xlu1 %v1535_v24, %s1346_s0  ;;  %382 = vrot.lane.b32.xlu0 %v1537_v25, %s1346_s0 }
 0x155   :  { %v1543_v26 = vpop.f32.mrb[4].mxu0 }
 0x156   :  { %v1545_v27 = vpop.f32.mrb[5].mxu0 }
 0x157   :  { %388 = vrot.lane.b32.xlu1 %v1543_v26, %s1346_s0  ;;  %386 = vrot.lane.b32.xlu0 %v1545_v27, %s1346_s0 }
 0x159   :  { %v1551_v28 = vpop.f32.mrb[6].mxu0 }
 0x15a   :  { %v1553_v29 = vpop.f32.mrb[7].mxu0 }
 0x15b   :  { %392 = vrot.lane.b32.xlu1 %v1551_v28, %s1346_s0  ;;  %390 = vrot.lane.b32.xlu0 %v1553_v29, %s1346_s0 }
 0x15d   :  { %v1559_v30 = vpop.f32.mrb[8].mxu0 }
 0x15e   :  { %v1561_v31 = vpop.f32.mrb[9].mxu0 }
 0x15f   :  { %396 = vrot.lane.b32.xlu0 %v1559_v30, %s1346_s0  ;;  %394 = vrot.lane.b32.xlu1 %v1561_v31, %s1346_s0 }
 0x161   :  { %v1567_v32 = vpop.f32.mrb[10].mxu0 }
 0x162   :  { %v1569_v33 = vpop.f32.mrb[11].mxu0 }
 0x163   :  { %400 = vrot.lane.b32.xlu1 %v1567_v32, %s1346_s0  ;;  %398 = vrot.lane.b32.xlu0 %v1569_v33, %s1346_s0 }
 0x165   :  { %v1575_v34 = vpop.f32.mrb[12].mxu0 }
 0x166   :  { %v1577_v35 = vpop.f32.mrb[13].mxu0 }
 0x167   :  { %404 = vrot.lane.b32.xlu1 %v1575_v34, %s1346_s0  ;;  %402 = vrot.lane.b32.xlu0 %v1577_v35, %s1346_s0 }
 0x169   :  { %v1583_v36 = vpop.f32.mrb[14].mxu0 }
 0x16a   :  { %v1585_v37 = vpop.f32.mrb[15].mxu0 }
 0x16b   :  { %408 = vrot.lane.b32.xlu1 %v1583_v36, %s1346_s0  ;;  %406 = vrot.lane.b32.xlu0 %v1585_v37, %s1346_s0 }
 0x1c0   :  { %v381_v47 = vpop.permute.xlu0 %380 }
 0x1c1   :  { %v427_v48 = vadd.f32 %v381_v47, %v1531_v23  ;;  %v379_v49 = vpop.permute.xlu1 %378 }
 0x1c2   :  { %v446_v50 = vadd.f32 %v1609_v46, %v379_v49 }
 0x1c3   :  { %v447_v51 = vadd.f32 %v1609_v46, %v427_v48 }
 0x1c4   :  { %v1614_v52 = vmax.f32 %v446_v50, 0.0 }
 0x1c5   :  { %v1616_v53 = vmax.f32 %v447_v51, 0.0  ;;  %v385_v54 = vpop.permute.xlu1 %384  ;;  %v383_v55 = vpop.permute.xlu0 %382 }
 0x1c6   :  { %v429_v56 = vadd.f32 %v385_v54, %v1537_v25  ;;  %v428_v57 = vadd.f32 %v1527_v22, %v383_v55  ;;  %594 = vrot.lane.b32.xlu0 %v1614_v52, %s1347_s2  ;;  %v545_v58 = vrot.slane %v1614_v52, 1 }
 0x1c7   :  { %596 = vrot.lane.b32.xlu1 %v1616_v53, %s1347_s2  ;;  %v546_v59 = vrot.slane %v1616_v53, 1 }
 0x1c8   :  { %v449_v60 = vadd.f32 %v1609_v46, %v429_v56  ;;  %v448_v61 = vadd.f32 %v1609_v46, %v428_v57  ;;  %v578_v62 = vsel %vm577_vm3, %v545_v58, 0.0 }
 0x1c9   :  { %v389_v63 = vpop.permute.xlu1 %388  ;;  %v387_v0 = vpop.permute.xlu0 %386  ;;  %v579_v1 = vsel %vm577_vm3, %v546_v59, 0.0 }
 0x1ca   :  { %v1630_v2 = vmax.f32 %v449_v60, 0.0  ;;  %v1632_v3 = vmax.f32 %v448_v61, 0.0  ;;  %v431_v4 = vadd.f32 %v389_v63, %v1545_v27  ;;  %v430_v5 = vadd.f32 %v1535_v24, %v387_v0  ;;  %658 = vrot.lane.b32.xlu0 %v578_v62, %s1345_s19 }
 0x1cb   :  { %660 = vrot.lane.b32.xlu1 %v579_v1, %s1345_s19 }
 0x1cc   :  { %v450_v6 = vadd.f32 %v1609_v46, %v430_v5  ;;  %v547_v7 = vrot.slane %v1632_v3, 1  ;;  %v451_v8 = vadd.f32 %v1609_v46, %v431_v4  ;;  %v548_v9 = vrot.slane %v1630_v2, 1 }
 0x1cd   :  { %v393_v10 = vpop.permute.xlu1 %392  ;;  %v391_v12 = vpop.permute.xlu0 %390 }
 0x1ce   :  { %598 = vrot.lane.b32.xlu0 %v1632_v3, %s1347_s2  ;;  %v1646_v11 = vmax.f32 %v450_v6, 0.0  ;;  %v580_v13 = vsel %vm577_vm3, %v547_v7, 0.0  ;;  %v1649_v14 = vmax.f32 %v451_v8, 0.0  ;;  %v433_v15 = vadd.f32 %v393_v10, %v1553_v29 }
 0x1cf   :  { %600 = vrot.lane.b32.xlu1 %v1630_v2, %s1347_s2  ;;  %v581_v16 = vsel %vm577_vm3, %v548_v9, 0.0  ;;  %v432_v17 = vadd.f32 %v1543_v26, %v391_v12 }
 0x1d0   :  { %v549_v18 = vrot.slane %v1646_v11, 1  ;;  %v453_v19 = vadd.f32 %v1609_v46, %v433_v15  ;;  %v550_v20 = vrot.slane %v1649_v14, 1 }
 0x1d1   :  { %v397_v21 = vpop.permute.xlu0 %396  ;;  %v452_v38 = vadd.f32 %v1609_v46, %v432_v17  ;;  %v395_v40 = vpop.permute.xlu1 %394 }
 0x1d2   :  { %662 = vrot.lane.b32.xlu0 %v580_v13, %s1345_s19  ;;  %v582_v41 = vsel %vm577_vm3, %v549_v18, 0.0  ;;  %v1665_v42 = vmax.f32 %v453_v19, 0.0  ;;  %v435_v43 = vadd.f32 %v397_v21, %v1561_v31  ;;  %v454_v45 = vadd.f32 %v1609_v46, %v395_v40 }
 0x1d3   :  { %664 = vrot.lane.b32.xlu1 %v581_v16, %s1345_s19  ;;  %v583_v47 = vsel %vm577_vm3, %v550_v20, 0.0  ;;  %v1672_v48 = vmax.f32 %v452_v38, 0.0 }
 0x1d4   :  { %v455_v49 = vadd.f32 %v1609_v46, %v435_v43  ;;  %v1675_v50 = vmax.f32 %v454_v45, 0.0  ;;  %v552_v54 = vrot.slane %v1665_v42, 1 }
 0x1d5   :  { %v399_v51 = vpop.permute.xlu0 %398  ;;  %v401_v55 = vpop.permute.xlu1 %400  ;;  %v551_v57 = vrot.slane %v1672_v48, 1 }
 0x1d6   :  { %602 = vrot.lane.b32.xlu0 %v1646_v11, %s1347_s2  ;;  %v436_v56 = vadd.f32 %v1559_v30, %v399_v51  ;;  %v1684_v58 = vmax.f32 %v455_v49, 0.0  ;;  %v437_v59 = vadd.f32 %v401_v55, %v1569_v33  ;;  %v585_v60 = vsel %vm577_vm3, %v552_v54, 0.0 }
 0x1d7   :  { %604 = vrot.lane.b32.xlu1 %v1649_v14, %s1347_s2  ;;  %v584_v62 = vsel %vm577_vm3, %v551_v57, 0.0  ;;  %v553_v63 = vrot.slane %v1675_v50, 1 }
 0x1d8   :  { %v456_v61 = vadd.f32 %v1609_v46, %v436_v56  ;;  %v457_v0 = vadd.f32 %v1609_v46, %v437_v59  ;;  %v554_v4 = vrot.slane %v1684_v58, 1 }
 0x1d9   :  { %v403_v1 = vpop.permute.xlu0 %402  ;;  %v405_v5 = vpop.permute.xlu1 %404  ;;  %v586_v8 = vsel %vm577_vm3, %v553_v63, 0.0 }
 0x1da   :  { %666 = vrot.lane.b32.xlu0 %v582_v41, %s1345_s19  ;;  %v1699_v6 = vmax.f32 %v456_v61, 0.0  ;;  %v438_v7 = vadd.f32 %v1567_v32, %v403_v1  ;;  %v1703_v9 = vmax.f32 %v457_v0, 0.0  ;;  %v439_v10 = vadd.f32 %v405_v5, %v1577_v35 }
 0x1db   :  { %668 = vrot.lane.b32.xlu1 %v583_v47, %s1345_s19  ;;  %v587_v12 = vsel %vm577_vm3, %v554_v4, 0.0 }
 0x1dc   :  { %v458_v13 = vadd.f32 %v1609_v46, %v438_v7  ;;  %v555_v15 = vrot.slane %v1699_v6, 1  ;;  %v459_v16 = vadd.f32 %v1609_v46, %v439_v10  ;;  %v556_v18 = vrot.slane %v1703_v9, 1 }
 0x1dd   :  { %v407_v17 = vpop.permute.xlu0 %406  ;;  %v409_v19 = vpop.permute.xlu1 %408 }
 0x1de   :  { %606 = vrot.lane.b32.xlu0 %v1672_v48, %s1347_s2  ;;  %v1717_v20 = vmax.f32 %v458_v13, 0.0  ;;  %v440_v21 = vadd.f32 %v1575_v34, %v407_v17  ;;  %v588_v38 = vsel %vm577_vm3, %v555_v15, 0.0  ;;  %v1721_v40 = vmax.f32 %v459_v16, 0.0 }
 0x1df   :  { %608 = vrot.lane.b32.xlu1 %v1665_v42, %s1347_s2  ;;  %v441_v41 = vadd.f32 %v409_v19, %v1585_v37  ;;  %v589_v43 = vsel %vm577_vm3, %v556_v18, 0.0  ;;  %v502_v13 = vrot.slane %v1649_v14, 7 }
 0x1e0   :  { %v460_v45 = vadd.f32 %v1609_v46, %v440_v21  ;;  %v557_v47 = vrot.slane %v1717_v20, 1  ;;  %v558_v51 = vrot.slane %v1721_v40, 1 }
 0x1e1   :  { %v461_v49 = vadd.f32 %v1609_v46, %v441_v41  ;;  %v534_v18 = vsel %vm86_vm0, 0.0, %v502_v13 }
 0x1e2   :  { %610 = vrot.lane.b32.xlu0 %v1675_v50, %s1347_s2  ;;  %v1735_v54 = vmax.f32 %v460_v45, 0.0  ;;  %v590_v55 = vsel %vm577_vm3, %v557_v47, 0.0  ;;  %v591_v57 = vsel %vm577_vm3, %v558_v51, 0.0  ;;  %v503_v45 = vrot.slane %v1672_v48, 7 }
 0x1e3   :  { %672 = vrot.lane.b32.xlu1 %v585_v60, %s1345_s19  ;;  %v1738_v56 = vmax.f32 %v461_v49, 0.0  ;;  %v504_v47 = vrot.slane %v1665_v42, 7 }
 0x1e4   :  { %v559_v46 = vrot.slane %v1735_v54, 1 }
 0x1e5   :  { %v560_v59 = vrot.slane %v1738_v56, 1 }
 0x1e6   :  { %670 = vrot.lane.b32.xlu0 %v584_v62, %s1345_s19  ;;  %v592_v60 = vsel %vm577_vm3, %v559_v46, 0.0  ;;  %v1349_v62 = vmov 0.0  }
 0x1e7   :  { %612 = vrot.lane.b32.xlu1 %v1684_v58, %s1347_s2  ;;  %v593_v61 = vsel %vm577_vm3, %v560_v59, 0.0  ;;  %v536_v59 = vsel %vm86_vm0, 0.0, %v504_v47 }
 0x1ea   :  { %674 = vrot.lane.b32.xlu0 %v586_v8, %s1345_s19 }
 0x1eb   :  { %676 = vrot.lane.b32.xlu1 %v587_v12, %s1345_s19 }
 0x1ee   :  { %614 = vrot.lane.b32.xlu0 %v1699_v6, %s1347_s2 }
 0x1ef   :  { %616 = vrot.lane.b32.xlu1 %v1703_v9, %s1347_s2 }
 0x1f2   :  { %678 = vrot.lane.b32.xlu0 %v588_v38, %s1345_s19 }
 0x1f3   :  { %680 = vrot.lane.b32.xlu1 %v589_v43, %s1345_s19 }
 0x1f6   :  { %618 = vrot.lane.b32.xlu0 %v1717_v20, %s1347_s2 }
 0x1f7   :  { %620 = vrot.lane.b32.xlu1 %v1721_v40, %s1347_s2 }
 0x1fa   :  { %682 = vrot.lane.b32.xlu0 %v590_v55, %s1345_s19  ;;  %v505_v55 = vrot.slane %v1675_v50, 7 }
 0x1fb   :  { %684 = vrot.lane.b32.xlu1 %v591_v57, %s1345_s19  ;;  %v535_v57 = vsel %vm86_vm0, 0.0, %v503_v45 }
 0x1fc   :  { %v537_v50 = vsel %vm86_vm0, 0.0, %v505_v55 }
 0x1fe   :  { %622 = vrot.lane.b32.xlu0 %v1735_v54, %s1347_s2 }
 0x1ff   :  { %624 = vrot.lane.b32.xlu1 %v1738_v56, %s1347_s2 }
 0x202   :  { %686 = vrot.lane.b32.xlu0 %v592_v60, %s1345_s19 }
 0x203   :  { %688 = vrot.lane.b32.xlu1 %v593_v61, %s1345_s19  ;;  %v506_v61 = vrot.slane %v1684_v58, 7 }
 0x206   :  { %1097 = vrot.lane.b32.xlu0 %v1527_v22, %s1348_s3  ;;  %v497_v22 = vrot.slane %v1614_v52, 7 }
 0x207   :  { %1028 = vrot.lane.b32.xlu1 %v1349_v62, %s1348_s3 }
 0x20a   :  { %1101 = vrot.lane.b32.xlu0 %v1535_v24, %s1348_s3  ;;  %v498_v24 = vrot.slane %v1616_v53, 7  ;;  %v500_v53 = vrot.slane %v1630_v2, 7  ;;  %v501_v2 = vrot.slane %v1646_v11, 7 }
 0x20b   :  { %1095 = vrot.lane.b32.xlu1 %v1531_v23, %s1348_s3 }
 0x20c   :  { %v532_v4 = vsel %vm86_vm0, 0.0, %v500_v53  ;;  %v533_v16 = vsel %vm86_vm0, 0.0, %v501_v2 }
 0x20e   :  { %1105 = vrot.lane.b32.xlu0 %v1543_v26, %s1348_s3  ;;  %v529_v26 = vsel %vm86_vm0, 0.0, %v497_v22 }
 0x20f   :  { %1099 = vrot.lane.b32.xlu1 %v1537_v25, %s1348_s3 }
 0x212   :  { %1109 = vrot.lane.b32.xlu0 %v1551_v28, %s1348_s3  ;;  %v530_v28 = vsel %vm86_vm0, 0.0, %v498_v24  ;;  %v538_v24 = vsel %vm86_vm0, 0.0, %v506_v61 }
 0x213   :  { %1103 = vrot.lane.b32.xlu1 %v1545_v27, %s1348_s3 }
 0x216   :  { %1113 = vrot.lane.b32.xlu0 %v1559_v30, %s1348_s3 }
 0x217   :  { %1107 = vrot.lane.b32.xlu1 %v1553_v29, %s1348_s3 }
 0x21a   :  { %1117 = vrot.lane.b32.xlu0 %v1567_v32, %s1348_s3 }
 0x21b   :  { %1111 = vrot.lane.b32.xlu1 %v1561_v31, %s1348_s3 }
 0x21f   :  { %1115 = vrot.lane.b32.xlu1 %v1569_v33, %s1348_s3 }
 0x223   :  { %1119 = vrot.lane.b32.xlu1 %v1577_v35, %s1348_s3  ;;  %v499_v35 = vrot.slane %v1632_v3, 7 }
 0x225   :  { %v531_v0 = vsel %vm86_vm0, 0.0, %v499_v35 }
 0x238   :  { %v595_v23 = vpop.permute.xlu0 %594 }
 0x239   :  { %v597_v25 = vpop.permute.xlu1 %596  ;;  %v707_v27 = vsel %vm706_vm4, %v529_v26, %v595_v23 }
 0x23a   :  { %v708_v30 = vsel %vm706_vm4, %v530_v28, %v597_v25 }
 0x23c   :  { %v659_v29 = vpop.permute.xlu0 %658 }
 0x23d   :  { %v661_v31 = vpop.permute.xlu1 %660  ;;  %v723_v32 = vsel %vm151_vm1, %v707_v27, %v659_v29  ;;  %v507_v29 = vrot.slane %v1699_v6, 7  ;;  %v509_v6 = vrot.slane %v1717_v20, 7  ;;  %v511_v20 = vrot.slane %v1735_v54, 7 }
 0x23e   :  { %v724_v33 = vsel %vm151_vm1, %v708_v30, %v661_v31  ;;  %1304 = vmatprep.mubr.msk.f32.mxu1 %vm739_vm5, %v723_v32  ;;  %v508_v31 = vrot.slane %v1703_v9, 7 }
 0x23f   :  { %1305 = vmatmul.mubr.msk.f32.vlgmr.msra.gmra.mrb[0].mxu1 %vm739_vm5, %v724_v33  ;;  %v539_v33 = vsel %vm86_vm0, 0.0, %v507_v29 }
 0x240   :  { %v599_v52 = vpop.permute.xlu0 %598 }
 0x241   :  { %v601_v63 = vpop.permute.xlu1 %600  ;;  %v709_v1 = vsel %vm706_vm4, %v531_v0, %v599_v52  ;;  %v540_v52 = vsel %vm86_vm0, 0.0, %v508_v31 }
 0x242   :  { %v710_v7 = vsel %vm706_vm4, %v532_v4, %v601_v63 }
 0x244   :  { %v663_v5 = vpop.permute.xlu0 %662 }
 0x245   :  { %v725_v8 = vsel %vm151_vm1, %v709_v1, %v663_v5  ;;  %v665_v10 = vpop.permute.xlu1 %664  ;;  %v510_v5 = vrot.slane %v1721_v40, 7 }
 0x246   :  { %v726_v12 = vsel %vm151_vm1, %v710_v7, %v665_v10  ;;  %1307 = vmatprep.mubr.msk.f32.mxu1 %vm739_vm5, %v725_v8  ;;  %v541_v8 = vsel %vm86_vm0, 0.0, %v509_v6 }
 0x247   :  { %1308 = vmatmul.mubr.msk.f32.gmra.mrb[2].mxu1 %vm739_vm5, %v726_v12  ;;  %v542_v12 = vsel %vm86_vm0, 0.0, %v510_v5 }
 0x248   :  { %v603_v3 = vpop.permute.xlu0 %602 }
 0x249   :  { %v605_v15 = vpop.permute.xlu1 %604  ;;  %v711_v17 = vsel %vm706_vm4, %v533_v16, %v603_v3 }
 0x24a   :  { %v712_v21 = vsel %vm706_vm4, %v534_v18, %v605_v15 }
 0x24c   :  { %v667_v19 = vpop.permute.xlu0 %666 }
 0x24d   :  { %v727_v38 = vsel %vm151_vm1, %v711_v17, %v667_v19  ;;  %v669_v41 = vpop.permute.xlu1 %668  ;;  %v512_v17 = vrot.slane %v1738_v56, 7  ;;  %v543_v19 = vsel %vm86_vm0, 0.0, %v511_v20 }
 0x24e   :  { %v728_v43 = vsel %vm151_vm1, %v712_v21, %v669_v41  ;;  %1310 = vmatprep.mubr.msk.f32.mxu1 %vm739_vm5, %v727_v38 }
 0x24f   :  { %1311 = vmatmul.mubr.msk.f32.gmra.mrb[4].mxu1 %vm739_vm5, %v728_v43  ;;  %v544_v38 = vsel %vm86_vm0, 0.0, %v512_v17 }
 0x250   :  { %v607_v11 = vpop.permute.xlu0 %606 }
 0x251   :  { %v609_v14 = vpop.permute.xlu1 %608  ;;  %v713_v46 = vsel %vm706_vm4, %v535_v57, %v607_v11 }
 0x252   :  { %v714_v62 = vsel %vm706_vm4, %v536_v59, %v609_v14 }
 0x254   :  { %v611_v49 = vpop.permute.xlu0 %610 }
 0x255   :  { %v673_v51 = vpop.permute.xlu1 %672  ;;  %v715_v23 = vsel %vm706_vm4, %v537_v50, %v611_v49 }
 0x256   :  { %v730_v42 = vsel %vm151_vm1, %v714_v62, %v673_v51 }
 0x258   :  { %v671_v60 = vpop.permute.xlu0 %670 }
 0x259   :  { %v729_v22 = vsel %vm151_vm1, %v713_v46, %v671_v60  ;;  %v613_v48 = vpop.permute.xlu1 %612 }
 0x25a   :  { %1313 = vmatprep.mubr.msk.f32.mxu1 %vm739_vm5, %v729_v22  ;;  %v716_v58 = vsel %vm706_vm4, %v538_v24, %v613_v48 }
 0x25b   :  { %1314 = vmatmul.mubr.msk.f32.gmra.mrb[6].mxu1 %vm739_vm5, %v730_v42 }
 0x25c   :  { %v675_v25 = vpop.permute.xlu0 %674 }
 0x25d   :  { %v731_v26 = vsel %vm151_vm1, %v715_v23, %v675_v25  ;;  %v677_v27 = vpop.permute.xlu1 %676 }
 0x25e   :  { %v732_v28 = vsel %vm151_vm1, %v716_v58, %v677_v27  ;;  %1316 = vmatprep.mubr.msk.f32.mxu1 %vm739_vm5, %v731_v26 }
 0x25f   :  { %1317 = vmatmul.mubr.msk.f32.gmra.mrb[8].mxu1 %vm739_vm5, %v732_v28 }
 0x260   :  { %v615_v30 = vpop.permute.xlu0 %614 }
 0x261   :  { %v617_v32 = vpop.permute.xlu1 %616  ;;  %v717_v35 = vsel %vm706_vm4, %v539_v33, %v615_v30 }
 0x262   :  { %v718_v63 = vsel %vm706_vm4, %v540_v52, %v617_v32 }
 0x264   :  { %v679_v53 = vpop.permute.xlu0 %678 }
 0x265   :  { %v733_v0 = vsel %vm151_vm1, %v717_v35, %v679_v53  ;;  %v681_v1 = vpop.permute.xlu1 %680 }
 0x266   :  { %v734_v4 = vsel %vm151_vm1, %v718_v63, %v681_v1  ;;  %1319 = vmatprep.mubr.msk.f32.mxu1 %vm739_vm5, %v733_v0 }
 0x267   :  { %1320 = vmatmul.mubr.msk.f32.gmra.mrb[10].mxu1 %vm739_vm5, %v734_v4 }
 0x268   :  { %v619_v9 = vpop.permute.xlu0 %618 }
 0x269   :  { %v621_v7 = vpop.permute.xlu1 %620  ;;  %v719_v10 = vsel %vm706_vm4, %v541_v8, %v619_v9 }
 0x26a   :  { %v720_v3 = vsel %vm706_vm4, %v542_v12, %v621_v7 }
 0x26c   :  { %v683_v2 = vpop.permute.xlu0 %682 }
 0x26d   :  { %v735_v13 = vsel %vm151_vm1, %v719_v10, %v683_v2  ;;  %v685_v15 = vpop.permute.xlu1 %684 }
 0x26e   :  { %v736_v16 = vsel %vm151_vm1, %v720_v3, %v685_v15  ;;  %1322 = vmatprep.mubr.msk.f32.mxu1 %vm739_vm5, %v735_v13 }
 0x26f   :  { %1323 = vmatmul.mubr.msk.f32.gmra.mrb[12].mxu1 %vm739_vm5, %v736_v16 }
 0x270   :  { %v623_v40 = vpop.permute.xlu0 %622 }
 0x271   :  { %v625_v18 = vpop.permute.xlu1 %624  ;;  %v721_v21 = vsel %vm706_vm4, %v543_v19, %v623_v40 }
 0x272   :  { %v722_v43 = vsel %vm706_vm4, %v544_v38, %v625_v18 }
 0x274   :  { %v687_v41 = vpop.permute.xlu0 %686 }
 0x275   :  { %v737_v11 = vsel %vm151_vm1, %v721_v21, %v687_v41  ;;  %v689_v14 = vpop.permute.xlu1 %688 }
 0x276   :  { %v738_v45 = vsel %vm151_vm1, %v722_v43, %v689_v14  ;;  %1325 = vmatprep.mubr.msk.f32.mxu1 %vm739_vm5, %v737_v11 }
 0x277   :  { %1326 = vmatmul.mubr.msk.f32.gmra.mrb[14].mxu1 %vm739_vm5, %v738_v45 }
 0x278   :  { %v1098_v25 = vpop.permute.xlu0 %1097 }
 0x279   :  { %v1948_v23 = vpop.permute.xlu1 %1028 }
 0x27c   :  { %v1102_v26 = vpop.permute.xlu0 %1101 }
 0x27d   :  { %v1096_v24 = vpop.permute.xlu1 %1095 }
 0x280   :  { %v1952_v28 = vpop.permute.xlu0 %1105 }
 0x281   :  { %v1100_v58 = vpop.permute.xlu1 %1099 }
 0x285   :  { %v1104_v27 = vpop.permute.xlu1 %1103 }
 0x289   :  { %v1954_v29 = vpop.permute.xlu1 %1107 }
 0x28d   :  { %v1956_v30 = vpop.permute.xlu1 %1111 }
 0x312   :  { %v1860_v54 = vpop.f32.mrb[0].mxu1 }
 0x313   :  { %1014 = vrot.lane.b32.xlu0 %v1860_v54, %s1348_s3  ;;  %v1864_v56 = vpop.f32.mrb[1].mxu1  ;;  %951 = vrot.lane.b32.xlu1 %v1860_v54, %s1346_s0 }
 0x317   :  { %949 = vrot.lane.b32.xlu0 %v1864_v56, %s1346_s0 }
 0x31a   :  { %v1870_v47 = vpop.f32.mrb[2].mxu1 }
 0x31b   :  { %1018 = vrot.lane.b32.xlu0 %v1870_v47, %s1348_s3  ;;  %v1874_v49 = vpop.f32.mrb[3].mxu1  ;;  %955 = vrot.lane.b32.xlu1 %v1870_v47, %s1346_s0 }
 0x31f   :  { %953 = vrot.lane.b32.xlu0 %v1874_v49, %s1346_s0  ;;  %1016 = vrot.lane.b32.xlu1 %v1874_v49, %s1348_s3 }
 0x322   :  { %v1882_v51 = vpop.f32.mrb[4].mxu1 }
 0x323   :  { %1022 = vrot.lane.b32.xlu0 %v1882_v51, %s1348_s3  ;;  %v1886_v55 = vpop.f32.mrb[5].mxu1  ;;  %959 = vrot.lane.b32.xlu1 %v1882_v51, %s1346_s0 }
 0x327   :  { %957 = vrot.lane.b32.xlu0 %v1886_v55, %s1346_s0  ;;  %1020 = vrot.lane.b32.xlu1 %v1886_v55, %s1348_s3 }
 0x32e   :  { %v1315_v57 = vpop.f32.mrb[6].mxu1 }
 0x32f   :  { %1026 = vrot.lane.b32.xlu0 %v1315_v57, %s1348_s3  ;;  %v1895_v46 = vpop.f32.mrb[7].mxu1  ;;  %963 = vrot.lane.b32.xlu1 %v1315_v57, %s1346_s0 }
 0x332   :  { %v1898_v59 = vpop.f32.mrb[8].mxu1 }
 0x333   :  { %961 = vrot.lane.b32.xlu0 %v1895_v46, %s1346_s0  ;;  %v1902_v60 = vpop.f32.mrb[9].mxu1  ;;  %1024 = vrot.lane.b32.xlu1 %v1895_v46, %s1348_s3 }
 0x337   :  { %1030 = vrot.lane.b32.xlu0 %v1898_v59, %s1348_s3  ;;  %967 = vrot.lane.b32.xlu1 %v1898_v59, %s1346_s0 }
 0x33a   :  { %v1910_v61 = vpop.f32.mrb[10].mxu1 }
 0x33b   :  { %965 = vrot.lane.b32.xlu0 %v1902_v60, %s1346_s0  ;;  %v1914_v62 = vpop.f32.mrb[11].mxu1  ;;  %971 = vrot.lane.b32.xlu1 %v1910_v61, %s1346_s0 }
 0x33f   :  { %1034 = vrot.lane.b32.xlu0 %v1910_v61, %s1348_s3  ;;  %1032 = vrot.lane.b32.xlu1 %v1914_v62, %s1348_s3 }
 0x342   :  { %v1922_v22 = vpop.f32.mrb[12].mxu1 }
 0x343   :  { %969 = vrot.lane.b32.xlu0 %v1914_v62, %s1346_s0  ;;  %v1926_v48 = vpop.f32.mrb[13].mxu1  ;;  %975 = vrot.lane.b32.xlu1 %v1922_v22, %s1346_s0 }
 0x347   :  { %1038 = vrot.lane.b32.xlu0 %v1922_v22, %s1348_s3  ;;  %1036 = vrot.lane.b32.xlu1 %v1926_v48, %s1348_s3 }
 0x34a   :  { %v1327_v42 = vpop.f32.mrb[14].mxu1 }
 0x34b   :  { %973 = vrot.lane.b32.xlu0 %v1926_v48, %s1346_s0  ;;  %979 = vrot.lane.b32.xlu1 %v1327_v42, %s1346_s0  ;;  %v1937_v50 = vpop.f32.mrb[15].mxu1 }
 0x34f   :  { %1042 = vrot.lane.b32.xlu0 %v1327_v42, %s1348_s3  ;;  %1040 = vrot.lane.b32.xlu1 %v1937_v50, %s1348_s3 }
 0x353   :  { %1123 = vrot.lane.b32.xlu1 %v1585_v37, %s1348_s3  ;;  %977 = vrot.lane.b32.xlu0 %v1937_v50, %s1346_s0  ;;  %v1110_v37 = vpop.permute.xlu0 %1109 }
 0x357   :  { %1121 = vrot.lane.b32.xlu0 %v1575_v34, %s1348_s3  ;;  %v1958_v31 = vpop.permute.xlu0 %1113  ;;  %v1960_v34 = vpop.permute.xlu1 %1115 }
 0x35b   :  { %1125 = vrot.lane.b32.xlu0 %v1583_v36, %s1348_s3  ;;  %v1962_v32 = vpop.permute.xlu0 %1117  ;;  %v1077_v36 = vsub.s32 1, %v1591_v39  ;;  %v1965_v33 = vpop.permute.xlu1 %1119 }
 0x35d   :  { %v1968_v52 = vrot.slane %v1603_v44, %v1077_v36 }
 0x385   :  { %v1015_v35 = vpop.permute.xlu0 %1014  ;;  %v952_v53 = vpop.permute.xlu1 %951 }
 0x386   :  { %v998_v5 = vadd.f32 %v952_v53, %v1864_v56 }
 0x389   :  { %v950_v63 = vpop.permute.xlu0 %949 }
 0x38a   :  { %v1059_v0 = vadd.f32 %v1015_v35, %v950_v63 }
 0x38c   :  { %v1079_v1 = vadd.f32 %v1968_v52, %v1059_v0 }
 0x38d   :  { %v1019_v4 = vpop.permute.xlu0 %1018  ;;  %v956_v6 = vpop.permute.xlu1 %955 }
 0x38e   :  { %v1143_v9 = vadd.f32 %v1096_v24, %v1079_v1  ;;  %v1000_v20 = vadd.f32 %v956_v6, %v1874_v49 }
 0x390   :  { %v1159_v7 = vmax.f32 %v1143_v9, 0.0 }
 0x391   :  { %v954_v8 = vpop.permute.xlu0 %953  ;;  %v1017_v10 = vpop.permute.xlu1 %1016 }
 0x392   :  { %1175 = vst.msk [vmem:[%s2077_s4] sm:$0xff] %vm706_vm4, %v1159_v7  ;;  %v999_v39 = vadd.f32 %v1860_v54, %v954_v8  ;;  %v1060_v44 = vadd.f32 %v1017_v10, %v998_v5 }
 0x394   :  { %v1061_v12 = vadd.f32 %v1019_v4, %v999_v39  ;;  %v1080_v2 = vadd.f32 %v1968_v52, %v1060_v44 }
 0x395   :  { %v1023_v3 = vpop.permute.xlu0 %1022  ;;  %v960_v13 = vpop.permute.xlu1 %959 }
 0x396   :  { %v1081_v15 = vadd.f32 %v1968_v52, %v1061_v12  ;;  %v1144_v16 = vadd.f32 %v1098_v25, %v1080_v2  ;;  %v1002_v24 = vadd.f32 %v960_v13, %v1886_v55 }
 0x398   :  { %v1145_v40 = vadd.f32 %v1100_v58, %v1081_v15  ;;  %v1160_v17 = vmax.f32 %v1144_v16, 0.0 }
 0x399   :  { %v958_v18 = vpop.permute.xlu0 %957  ;;  %v1021_v19 = vpop.permute.xlu1 %1020 }
 0x39a   :  { %v1161_v21 = vmax.f32 %v1145_v40, 0.0  ;;  %1176 = vst.msk [vmem:[%s2077_s4 + $0x8] sm:$0xff] %vm706_vm4, %v1160_v17  ;;  %v1001_v38 = vadd.f32 %v1870_v47, %v958_v18  ;;  %v1062_v41 = vadd.f32 %v1021_v19, %v1000_v20 }
 0x39c   :  { %1177 = vst.msk [vmem:[%s2077_s4 + $0x10] sm:$0xff] %vm706_vm4, %v1161_v21  ;;  %v1063_v43 = vadd.f32 %v1023_v3, %v1001_v38  ;;  %v1082_v11 = vadd.f32 %v1968_v52, %v1062_v41 }
 0x39e   :  { %v1083_v14 = vadd.f32 %v1968_v52, %v1063_v43  ;;  %v1146_v45 = vadd.f32 %v1102_v26, %v1082_v11 }
 0x3a0   :  { %v1147_v54 = vadd.f32 %v1104_v27, %v1083_v14  ;;  %v1162_v56 = vmax.f32 %v1146_v45, 0.0 }
 0x3a1   :  { %v1027_v49 = vpop.permute.xlu0 %1026  ;;  %v964_v57 = vpop.permute.xlu1 %963 }
 0x3a2   :  { %v1163_v42 = vmax.f32 %v1147_v54, 0.0  ;;  %1178 = vst.msk [vmem:[%s2077_s4 + $0x18] sm:$0xff] %vm706_vm4, %v1162_v56  ;;  %v1004_v47 = vadd.f32 %v964_v57, %v1895_v46 }
 0x3a4   :  { %1179 = vst.msk [vmem:[%s2077_s4 + $0x20] sm:$0xff] %vm706_vm4, %v1163_v42  ;;  %v1066_v25 = vadd.f32 %v1948_v23, %v1004_v47 }
 0x3a5   :  { %v962_v58 = vpop.permute.xlu0 %961  ;;  %v1025_v26 = vpop.permute.xlu1 %1024 }
 0x3a6   :  { %v1086_v27 = vadd.f32 %v1968_v52, %v1066_v25  ;;  %v1003_v36 = vadd.f32 %v1882_v51, %v962_v58  ;;  %v1064_v35 = vadd.f32 %v1025_v26, %v1002_v24 }
 0x3a8   :  { %v1150_v53 = vadd.f32 %v1110_v37, %v1086_v27  ;;  %v1065_v63 = vadd.f32 %v1027_v49, %v1003_v36  ;;  %v1084_v46 = vadd.f32 %v1968_v52, %v1064_v35 }
 0x3a9   :  { %v1031_v0 = vpop.permute.xlu0 %1030  ;;  %v968_v55 = vpop.permute.xlu1 %967 }
 0x3aa   :  { %v1166_v1 = vmax.f32 %v1150_v53, 0.0  ;;  %v1085_v4 = vadd.f32 %v1968_v52, %v1065_v63  ;;  %v1148_v6 = vadd.f32 %v1952_v28, %v1084_v46  ;;  %v1006_v28 = vadd.f32 %v968_v55, %v1902_v60 }
 0x3ac   :  { %1182 = vst.msk [vmem:[%s2077_s4 + $0x38] sm:$0xff] %vm706_vm4, %v1166_v1  ;;  %v1149_v9 = vadd.f32 %v1954_v29, %v1085_v4  ;;  %v1164_v51 = vmax.f32 %v1148_v6, 0.0 }
 0x3ad   :  { %v966_v5 = vpop.permute.xlu0 %965  ;;  %v972_v37 = vpop.permute.xlu1 %971 }
 0x3ae   :  { %v1165_v7 = vmax.f32 %v1149_v9, 0.0  ;;  %1180 = vst.msk [vmem:[%s2077_s4 + $0x28] sm:$0xff] %vm706_vm4, %v1164_v51  ;;  %v1067_v8 = vadd.f32 %v1031_v0, %v966_v5  ;;  %v1008_v20 = vadd.f32 %v972_v37, %v1914_v62 }
 0x3b0   :  { %1181 = vst.msk [vmem:[%s2077_s4 + $0x30] sm:$0xff] %vm706_vm4, %v1165_v7  ;;  %v1087_v10 = vadd.f32 %v1968_v52, %v1067_v8 }
 0x3b1   :  { %v1035_v29 = vpop.permute.xlu0 %1034  ;;  %v1033_v39 = vpop.permute.xlu1 %1032 }
 0x3b2   :  { %v1151_v44 = vadd.f32 %v1956_v30, %v1087_v10  ;;  %v1068_v12 = vadd.f32 %v1033_v39, %v1006_v28 }
 0x3b4   :  { %v1167_v2 = vmax.f32 %v1151_v44, 0.0  ;;  %v1088_v3 = vadd.f32 %v1968_v52, %v1068_v12 }
 0x3b5   :  { %v970_v13 = vpop.permute.xlu0 %969  ;;  %v976_v15 = vpop.permute.xlu1 %975 }
 0x3b6   :  { %1183 = vst.msk [vmem:[%s2077_s4 + $0x40] sm:$0xff] %vm706_vm4, %v1167_v2  ;;  %v1152_v16 = vadd.f32 %v1958_v31, %v1088_v3  ;;  %v1007_v60 = vadd.f32 %v1898_v59, %v970_v13  ;;  %v1010_v57 = vadd.f32 %v976_v15, %v1926_v48 }
 0x3b8   :  { %v1168_v40 = vmax.f32 %v1152_v16, 0.0  ;;  %v1069_v17 = vadd.f32 %v1035_v29, %v1007_v60 }
 0x3b9   :  { %v1039_v30 = vpop.permute.xlu0 %1038  ;;  %v1037_v18 = vpop.permute.xlu1 %1036 }
 0x3ba   :  { %1184 = vst.msk [vmem:[%s2077_s4 + $0x48] sm:$0xff] %vm706_vm4, %v1168_v40  ;;  %v1089_v19 = vadd.f32 %v1968_v52, %v1069_v17  ;;  %v1070_v21 = vadd.f32 %v1037_v18, %v1008_v20 }
 0x3bc   :  { %v1153_v38 = vadd.f32 %v1960_v34, %v1089_v19  ;;  %v1090_v31 = vadd.f32 %v1968_v52, %v1070_v21 }
 0x3bd   :  { %v974_v41 = vpop.permute.xlu0 %973  ;;  %v980_v59 = vpop.permute.xlu1 %979 }
 0x3be   :  { %v1169_v43 = vmax.f32 %v1153_v38, 0.0  ;;  %v1154_v62 = vadd.f32 %v1962_v32, %v1090_v31  ;;  %v1009_v11 = vadd.f32 %v1910_v61, %v974_v41  ;;  %v1012_v14 = vadd.f32 %v980_v59, %v1937_v50 }
 0x3c0   :  { %1185 = vst.msk [vmem:[%s2077_s4 + $0x50] sm:$0xff] %vm706_vm4, %v1169_v43  ;;  %v1170_v45 = vmax.f32 %v1154_v62, 0.0  ;;  %v1071_v54 = vadd.f32 %v1039_v30, %v1009_v11  ;;  %v1074_v34 = vadd.f32 %v1948_v23, %v1012_v14 }
 0x3c1   :  { %v1043_v56 = vpop.permute.xlu0 %1042  ;;  %v1041_v49 = vpop.permute.xlu1 %1040 }
 0x3c2   :  { %1186 = vst.msk [vmem:[%s2077_s4 + $0x58] sm:$0xff] %vm706_vm4, %v1170_v45  ;;  %v1091_v61 = vadd.f32 %v1968_v52, %v1071_v54  ;;  %v1094_v50 = vadd.f32 %v1968_v52, %v1074_v34  ;;  %v1072_v42 = vadd.f32 %v1041_v49, %v1010_v57 }
 0x3c4   :  { %v1155_v32 = vadd.f32 %v1965_v33, %v1091_v61  ;;  %v1092_v25 = vadd.f32 %v1968_v52, %v1072_v42 }
 0x3c5   :  { %v978_v47 = vpop.permute.xlu0 %977  ;;  %v1124_v36 = vpop.permute.xlu1 %1123 }
 0x3c6   :  { %v1171_v24 = vmax.f32 %v1155_v32, 0.0  ;;  %v1011_v23 = vadd.f32 %v1922_v22, %v978_v47 }
 0x3c8   :  { %1187 = vst.msk [vmem:[%s2077_s4 + $0x60] sm:$0xff] %vm706_vm4, %v1171_v24  ;;  %v1073_v48 = vadd.f32 %v1043_v56, %v1011_v23 }
 0x3c9   :  { %v1122_v58 = vpop.permute.xlu0 %1121 }
 0x3ca   :  { %v1093_v26 = vadd.f32 %v1968_v52, %v1073_v48  ;;  %v1156_v27 = vadd.f32 %v1122_v58, %v1092_v25 }
 0x3cc   :  { %v1157_v35 = vadd.f32 %v1124_v36, %v1093_v26  ;;  %v1172_v33 = vmax.f32 %v1156_v27, 0.0 }
 0x3cd   :  { %v1126_v53 = vpop.permute.xlu0 %1125 }
 0x3ce   :  { %v1173_v63 = vmax.f32 %v1157_v35, 0.0  ;;  %1188 = vst.msk [vmem:[%s2077_s4 + $0x68] sm:$0xff] %vm706_vm4, %v1172_v33  ;;  %v1158_v22 = vadd.f32 %v1126_v53, %v1094_v50 }
 0x3d0   :  { %1189 = vst.msk [vmem:[%s2077_s4 + $0x70] sm:$0xff] %vm706_vm4, %v1173_v63  ;;  %v1174_v46 = vmax.f32 %v1158_v22, 0.0 }
 0x3d2   :  { %1190 = vst.msk [vmem:[%s2077_s4 + $0x78] sm:$0xff] %vm706_vm4, %v1174_v46 }

</bundles_post_ra>
